<compile_context>
chip_gen: v5e
topology: v5e:2x2
jax: 0.10.0
libtpu: 0.0.40
codegen_flags: <defaults>
</compile_context>

<pallas_src>
import functools

import jax
import jax.numpy as jnp
from jax.experimental import pallas as pl
from jax.experimental.pallas import tpu as pltpu


# --------------------------- generation tuning ------------------------------

def _vmem_limit_bytes():
    """Per-generation VMEM limit (review: don't cap v5e/v6e at the v7x limit)."""
    try:
        kind = jax.devices()[0].device_kind.lower()
    except Exception:
        kind = ""
    if "v5" in kind or "v6" in kind:
        return 64 * 1024 * 1024        # 128 MiB physical on v5e / v6e
    return 32 * 1024 * 1024            # v7x has 64 MiB physical; stay safe


def _batch_tile(B, N):
    """Batch elements per grid step: fill the MXU (M = Bt*N rows) and amortize
    the ~0.35us/step overhead, but keep row tiles <= 1024 to bound vreg/VMEM
    pressure.  Requires Bt | B; falls back to Bt=1 if N is not sublane-aligned
    (the in-kernel (Bt,N,D)<->(Bt*N,D) reshapes need N % 8 == 0)."""
    if N % 8 != 0:
        return 1
    best = 1
    for bt in range(1, B + 1):
        if B % bt == 0 and bt * N <= 1024:
            best = bt
    return best


# ------------------------------ fused kernel --------------------------------

def _eor_kernel(beta, n_blocks, n_mlp_blocks, n_heads, D, P, Bt, N, d_in,
                x_ref, prev_ref, w_in_ref, b_in_ref,
                w1s_ref, w2s_ref, bks_ref,
                hw0_ref, hb0_ref, hws_ref, hbs_ref, wf_ref, bf_ref,
                pts_ref, samp_ref, head_ref):
    """Fused SetNet encoder + all per-point heads for Bt batch elements."""
    f32, bf16 = jnp.float32, jnp.bfloat16
    M = Bt * N

    x = x_ref[...].reshape(M, d_in)
    prev = prev_ref[...].reshape(M, D)

    # input lift: h = x @ W_in + b_in + prev
    h = (jnp.dot(x.astype(bf16), w_in_ref[...], preferred_element_type=f32)
         + b_in_ref[...] + prev)

    # SetNet residual blocks; h is carried as a value (vregs / VMEM), no
    # scratch round-trips.  NOTE: the per-set mean is cast to bf16 for the
    # MXU (documented tolerance vs. an all-f32 reference).
    for i in range(n_blocks):                                   # static unroll
        pooled = jnp.mean(h.reshape(Bt, N, D), axis=1)          # (Bt, D) f32
        t2 = jnp.dot(pooled.astype(bf16), w2s_ref[i],
                     preferred_element_type=f32)                # (Bt, D)
        t2 = jnp.broadcast_to(t2[:, None, :], (Bt, N, D)).reshape(M, D)
        t = (jnp.dot(h.astype(bf16), w1s_ref[i],
                     preferred_element_type=f32)
             + t2 + bks_ref[i])
        h = h + beta * jnp.maximum(t, 0.0)                      # f32 epilogue

    pts_ref[...] = h.reshape(Bt, N, D)
    samp_ref[...] = jnp.mean(h.reshape(Bt, N, D), axis=1, keepdims=True)

    # Fused per-point heads (class + feature heads + noise) while h is still
    # resident.  Block 0 of all heads is one (M,D)@(D,H*D) MXU pass.
    if n_mlp_blocks > 0:
        t0 = (jnp.dot(h.astype(bf16), hw0_ref[...],
                      preferred_element_type=f32) + hb0_ref[...])   # (M, H*D)
        hs = []
        for hid in range(n_heads):                              # static unroll
            hh = h + beta * jnp.maximum(t0[:, hid * D:(hid + 1) * D], 0.0)
            for i in range(1, n_mlp_blocks):
                idx = hid * (n_mlp_blocks - 1) + (i - 1)
                t = (jnp.dot(hh.astype(bf16), hws_ref[idx],
                             preferred_element_type=f32) + hbs_ref[idx])
                hh = hh + beta * jnp.maximum(t, 0.0)
            hs.append(hh)
    else:
        hs = [h] * n_heads

    h_all = jnp.concatenate(hs, axis=-1) if n_heads > 1 else hs[0]  # (M, H*D)
    head = (jnp.dot(h_all.astype(bf16), wf_ref[...],
                    preferred_element_type=f32) + bf_ref[...])      # (M, P)
    head_ref[...] = head.reshape(Bt, N, P)


def _eor_fused_call(packed, x, prev, beta):
    """One pallas_call: encoder + per-point heads, grid over batch tiles."""
    B, N, d_in = x.shape
    meta = packed["meta"]
    D, P = meta["D"], meta["P"]
    nb, nmb, H = meta["n_blocks"], meta["n_mlp_blocks"], meta["n_heads"]
    Bt = _batch_tile(B, N)
    n_rest = packed["hws"].shape[0]

    kern = functools.partial(_eor_kernel, beta, nb, nmb, H, D, P, Bt, N, d_in)
    pts, samp, head = pl.pallas_call(
        kern,
        out_shape=(jax.ShapeDtypeStruct((B, N, D), jnp.float32),
                   jax.ShapeDtypeStruct((B, 1, D), jnp.float32),
                   jax.ShapeDtypeStruct((B, N, P), jnp.float32)),
        grid=(B // Bt,),
        in_specs=[
            pl.BlockSpec((Bt, N, d_in), lambda b: (b, 0, 0)),
            pl.BlockSpec((Bt, N, D), lambda b: (b, 0, 0)),
            pl.BlockSpec((d_in, D), lambda b: (0, 0)),
            pl.BlockSpec((1, D), lambda b: (0, 0)),
            pl.BlockSpec((nb, D, D), lambda b: (0, 0, 0)),
            pl.BlockSpec((nb, D, D), lambda b: (0, 0, 0)),
            pl.BlockSpec((nb, 1, D), lambda b: (0, 0, 0)),
            pl.BlockSpec((D, H * D), lambda b: (0, 0)),
            pl.BlockSpec((1, H * D), lambda b: (0, 0)),
            pl.BlockSpec((n_rest, D, D), lambda b: (0, 0, 0)),
            pl.BlockSpec((n_rest, 1, D), lambda b: (0, 0, 0)),
            pl.BlockSpec((H * D, P), lambda b: (0, 0)),
            pl.BlockSpec((1, P), lambda b: (0, 0)),
        ],
        out_specs=(
            pl.BlockSpec((Bt, N, D), lambda b: (b, 0, 0)),
            pl.BlockSpec((Bt, 1, D), lambda b: (b, 0, 0)),
            pl.BlockSpec((Bt, N, P), lambda b: (b, 0, 0)),
        ),
        compiler_params=pltpu.CompilerParams(
            dimension_semantics=("parallel",),
            vmem_limit_bytes=_vmem_limit_bytes()),
    )(x, prev, packed["w_in"], packed["b_in"], packed["w1s"], packed["w2s"],
      packed["bks"], packed["hw0"], packed["hb0"], packed["hws"],
      packed["hbs"], packed["wf"], packed["bf"])
    return pts, samp.reshape(B, D), head


def _reg_head_jnp(x, p, beta):
    # Tiny (B rows) regression head: plain XLA (a kernel launch costs more
    # than the compute it would hide).
    h = x
    for i in range(p["ws"].shape[0]):
        h = h + beta * jax.nn.relu(h @ p["ws"][i] + p["bs"][i])
    return h @ p["wf"] + p["bf"]


# ----------------------------- parameters -----------------------------------

def _linear_init(key, d_in, d_out):
    kw, kb = jax.random.split(key)
    w = jax.random.normal(kw, (d_in, d_out), jnp.float32) / jnp.sqrt(float(d_in))
    b = 0.01 * jax.random.normal(kb, (1, d_out), jnp.float32)
    return w, b


def init_head_params(key, d, d_out, n_blocks):
    keys = jax.random.split(key, n_blocks + 1)
    ws, bs = [], []
    for i in range(n_blocks):
        w, b = _linear_init(keys[i], d, d)
        ws.append(w)
        bs.append(b)
    wf, bf = _linear_init(keys[-1], d, d_out)
    return dict(ws=jnp.stack(ws), bs=jnp.stack(bs), wf=wf, bf=bf)


def init_encoder_params(key, d_in, d, n_blocks):
    keys = jax.random.split(key, n_blocks + 1)
    w_in, b_in = _linear_init(keys[0], d_in, d)
    blocks = []
    for i in range(n_blocks):
        k1, k2 = jax.random.split(keys[i + 1])
        w1, b = _linear_init(k1, d, d)
        w2, _ = _linear_init(k2, d, d)
        blocks.append(dict(w1=w1, w2=w2, b=b))
    return dict(w_in=w_in, b_in=b_in, blocks=blocks)


def init_eor_params(key, d_in, d, out_dim, feat_dims, n_blocks, n_mlp_blocks):
    k_enc, k_cls, k_reg, k_feat, k_noise = jax.random.split(key, 5)
    feat_keys = jax.random.split(k_feat, max(len(feat_dims), 1))
    return dict(
        encoder=init_encoder_params(k_enc, d_in, d, n_blocks),
        class_head=init_head_params(k_cls, d, 1, n_mlp_blocks),
        reg_head=init_head_params(k_reg, d, out_dim, n_mlp_blocks),
        features_head=[
            init_head_params(feat_keys[i], d, fd, n_mlp_blocks)
            for i, fd in enumerate(feat_dims)
        ],
        noise_head=init_head_params(k_noise, d, d_in, n_mlp_blocks),
    )


def pack_eor_params(params):
    """One-time packing (hoisted out of the forward path per perf review)."""
    enc = params["encoder"]
    D = enc["w_in"].shape[1]
    nb = len(enc["blocks"])
    w1s = jnp.stack([b["w1"] for b in enc["blocks"]]).astype(jnp.bfloat16)
    w2s = jnp.stack([b["w2"] for b in enc["blocks"]]).astype(jnp.bfloat16)
    bks = jnp.stack([b["b"] for b in enc["blocks"]])                 # (nb,1,D)

    heads = [params["class_head"]] + list(params["features_head"]) \
        + [params["noise_head"]]
    H = len(heads)
    nmb = int(heads[0]["ws"].shape[0])

    # block 0 of every head, concatenated along the output axis -> one MXU pass
    hw0 = jnp.concatenate([p["ws"][0] for p in heads], axis=1).astype(jnp.bfloat16)
    hb0 = jnp.concatenate([p["bs"][0] for p in heads], axis=1)
    if nmb > 1:
        hws = jnp.concatenate([p["ws"][1:] for p in heads], axis=0).astype(jnp.bfloat16)
        hbs = jnp.concatenate([p["bs"][1:] for p in heads], axis=0)
    else:
        hws = jnp.zeros((1, D, D), jnp.bfloat16)                    # never read
        hbs = jnp.zeros((1, 1, D), jnp.float32)

    douts = [p["wf"].shape[1] for p in heads]
    total = sum(douts)
    P = max(128, ((total + 127) // 128) * 128)                       # lane-dense
    wf = jnp.zeros((H * D, P), jnp.float32)
    bf = jnp.zeros((1, P), jnp.float32)
    offsets, off = [], 0
    for hi, p in enumerate(heads):
        d = douts[hi]
        wf = wf.at[hi * D:(hi + 1) * D, off:off + d].set(p["wf"])
        bf = bf.at[:, off:off + d].set(p["bf"])
        offsets.append((off, d))
        off += d

    return dict(
        w_in=enc["w_in"].astype(jnp.bfloat16), b_in=enc["b_in"],
        w1s=w1s, w2s=w2s, bks=bks,
        hw0=hw0, hb0=hb0, hws=hws, hbs=hbs,
        wf=wf.astype(jnp.bfloat16), bf=bf,
        reg_head=params["reg_head"],
        meta=dict(D=D, P=P, n_blocks=nb, n_mlp_blocks=nmb, n_heads=H,
                  n_feat=len(params["features_head"]), offsets=offsets),
    )


# ------------------------------ forward pass ---------------------------------

def eor_forward(packed, x, prev_pts_encoding, beta,
                freeze_encoder=False, noise_norm_function=None):
    pts_encoding, sample_encoding, head_out = _eor_fused_call(
        packed, x, prev_pts_encoding, beta)

    if freeze_encoder:
        # torch.no_grad() analogue: forward-identical; only detaches the
        # returned encodings (heads are fused in-kernel).
        pts_encoding = jax.lax.stop_gradient(pts_encoding)
        sample_encoding = jax.lax.stop_gradient(sample_encoding)
        head_out = jax.lax.stop_gradient(head_out)

    meta = packed["meta"]
    offs = meta["offsets"]
    cls_off, cls_d = offs[0]
    feat_offs = offs[1:1 + meta["n_feat"]]
    noise_off, noise_d = offs[-1]

    pred_logits = head_out[..., cls_off:cls_off + cls_d]
    pred_outliers = jax.nn.sigmoid(pred_logits)
    pred_features = tuple(head_out[..., o:o + d] for (o, d) in feat_offs)

    # TODO(synk): dataset-specific noise_norm_function (dataset_utils) is not
    # available; default matches the args.noise_loss_weight <= 0 branch (x*0).
    if noise_norm_function is None:
        noise_norm_function = lambda v: v * 0.0
    pred_noise = noise_norm_function(head_out[..., noise_off:noise_off + noise_d])

    pred_shape = _reg_head_jnp(sample_encoding, packed["reg_head"], beta)

    return (pred_shape, pred_outliers, pred_logits, pred_noise,
            pred_features, pts_encoding)


# --------------------------- pure-XLA reference ------------------------------

def _eor_reference(params, x, prev, beta):
    enc = params["encoder"]
    h = x @ enc["w_in"] + enc["b_in"] + prev
    for blk in enc["blocks"]:
        pooled = jnp.mean(h, axis=1, keepdims=True)
        t = h @ blk["w1"] + pooled @ blk["w2"] + blk["b"]
        h = h + beta * jax.nn.relu(t)
    pts, samp = h, jnp.mean(h, axis=1)

    def head(hh, p):
        for i in range(p["ws"].shape[0]):
            hh = hh + beta * jax.nn.relu(hh @ p["ws"][i] + p["bs"][i])
        return hh @ p["wf"] + p["bf"]

    logits = head(pts, params["class_head"])
    feats = tuple(head(pts, fp) for fp in params["features_head"])
    noise = head(pts, params["noise_head"])
    shape = head(samp, params["reg_head"])
    return pts, samp, logits, feats, noise, shape


# --------------------------------- main ---------------------------------------

if __name__ == "__main__":
    B, N = 2, 16          # batch of point sets, points per set
    D_IN = 4              # input dim per point
    ENC_DIM = 128         # args.encoder_dim (lane-dense feature axis)
    N_BLOCKS = 2          # args.n_blocks
    N_MLP_BLOCKS = 2      # args.n_mlp_blocks
    OUT_DIM = 5           # dataset_utils.get_output_dim
    FEAT_DIMS = (3, 2)    # dataset_utils.get_features_head_dims
    BETA = 0.5            # args.setnet_beta

    key = jax.random.PRNGKey(0)
    k_param, k_x, k_prev = jax.random.split(key, 3)

    params = init_eor_params(
        k_param, D_IN, ENC_DIM, OUT_DIM, FEAT_DIMS, N_BLOCKS, N_MLP_BLOCKS)
    packed = pack_eor_params(params)   # one-time weight packing (not per call)

    x = jax.random.normal(k_x, (B, N, D_IN), jnp.float32)
    prev_pts_encoding = jax.random.normal(k_prev, (B, N, ENC_DIM), jnp.float32)

    # module-level forward
    outputs = eor_forward(packed, x, prev_pts_encoding, BETA, freeze_encoder=False)
    outputs = jax.block_until_ready(outputs)
    pred_shape, pred_outliers, pred_logits, pred_noise, pred_features, pts_enc = outputs

    assert pred_shape.shape == (B, OUT_DIM)
    assert pred_outliers.shape == (B, N, 1)
    assert pred_logits.shape == (B, N, 1)
    assert pred_noise.shape == (B, N, D_IN)
    assert tuple(f.shape for f in pred_features) == tuple((B, N, d) for d in FEAT_DIMS)
    assert pts_enc.shape == (B, N, ENC_DIM)
    assert all(bool(jnp.all(jnp.isfinite(o))) for o in
               (pred_shape, pred_outliers, pred_logits, pred_noise, pts_enc))

    # kernel-level correctness vs. an all-f32 XLA reference (loose tolerance
    # for the bf16 MXU path)
    pts_k, samp_k, head_k = _eor_fused_call(packed, x, prev_pts_encoding, BETA)
    jax.block_until_ready((pts_k, samp_k, head_k))
    pts_r, samp_r, logit_r, feat_r, noise_r, shape_r = _eor_reference(
        params, x, prev_pts_encoding, BETA)

    def _close(a, b, tol=0.5):
        return bool(jnp.max(jnp.abs(a - b)) < tol)

    offs = packed["meta"]["offsets"]
    nfeat = packed["meta"]["n_feat"]
    assert _close(pts_k, pts_r)
    assert _close(samp_k, samp_r)
    assert _close(head_k[..., offs[0][0]:offs[0][0] + offs[0][1]], logit_r)
    for (o, d), fr in zip(offs[1:1 + nfeat], feat_r):
        assert _close(head_k[..., o:o + d], fr)
    o, d = offs[-1]
    assert _close(head_k[..., o:o + d], noise_r)
    assert _close(pred_shape, shape_r)

    print("KERNEL_OK")
</pallas_src>

<mosaic_0001>
module attributes {stable_mosaic.version = 11 : i64} {
  func.func @_eor_kernel(%arg0: i32, %arg1: memref<2x16x4xf32, #tpu.memory_space<vmem>>, %arg2: memref<2x16x128xf32, #tpu.memory_space<vmem>>, %arg3: memref<4x128xbf16, #tpu.memory_space<vmem>>, %arg4: memref<1x128xf32, #tpu.memory_space<vmem>>, %arg5: memref<2x128x128xbf16, #tpu.memory_space<vmem>>, %arg6: memref<2x128x128xbf16, #tpu.memory_space<vmem>>, %arg7: memref<2x1x128xf32, #tpu.memory_space<vmem>>, %arg8: memref<128x512xbf16, #tpu.memory_space<vmem>>, %arg9: memref<1x512xf32, #tpu.memory_space<vmem>>, %arg10: memref<4x128x128xbf16, #tpu.memory_space<vmem>>, %arg11: memref<4x1x128xf32, #tpu.memory_space<vmem>>, %arg12: memref<512x128xbf16, #tpu.memory_space<vmem>>, %arg13: memref<1x128xf32, #tpu.memory_space<vmem>>, %arg14: memref<2x16x128xf32, #tpu.memory_space<vmem>>, %arg15: memref<2x1x128xf32, #tpu.memory_space<vmem>>, %arg16: memref<2x16x128xf32, #tpu.memory_space<vmem>>) attributes {dimension_semantics = [#tpu.dimension_semantics<parallel>], iteration_bounds = array<i64: 1>, scalar_prefetch = 0 : i64, scratch_operands = 0 : i64, tpu.core_type = #tpu.core_type<tc>, window_params = [{transform_indices = @transform_0, window_bounds = array<i64: 2, 16, 4>}, {transform_indices = @transform_1, window_bounds = array<i64: 2, 16, 128>}, {pipeline_mode = #tpu.pipeline_mode<synchronous>, transform_indices = @transform_2, window_bounds = array<i64: 4, 128>}, {pipeline_mode = #tpu.pipeline_mode<synchronous>, transform_indices = @transform_3, window_bounds = array<i64: 1, 128>}, {pipeline_mode = #tpu.pipeline_mode<synchronous>, transform_indices = @transform_4, window_bounds = array<i64: 2, 128, 128>}, {pipeline_mode = #tpu.pipeline_mode<synchronous>, transform_indices = @transform_5, window_bounds = array<i64: 2, 128, 128>}, {pipeline_mode = #tpu.pipeline_mode<synchronous>, transform_indices = @transform_6, window_bounds = array<i64: 2, 1, 128>}, {pipeline_mode = #tpu.pipeline_mode<synchronous>, transform_indices = @transform_7, window_bounds = array<i64: 128, 512>}, {pipeline_mode = #tpu.pipeline_mode<synchronous>, transform_indices = @transform_8, window_bounds = array<i64: 1, 512>}, {pipeline_mode = #tpu.pipeline_mode<synchronous>, transform_indices = @transform_9, window_bounds = array<i64: 4, 128, 128>}, {pipeline_mode = #tpu.pipeline_mode<synchronous>, transform_indices = @transform_10, window_bounds = array<i64: 4, 1, 128>}, {pipeline_mode = #tpu.pipeline_mode<synchronous>, transform_indices = @transform_11, window_bounds = array<i64: 512, 128>}, {pipeline_mode = #tpu.pipeline_mode<synchronous>, transform_indices = @transform_12, window_bounds = array<i64: 1, 128>}, {transform_indices = @transform_13, window_bounds = array<i64: 2, 16, 128>}, {transform_indices = @transform_14, window_bounds = array<i64: 2, 1, 128>}, {transform_indices = @transform_15, window_bounds = array<i64: 2, 16, 128>}]} {
    %c0 = arith.constant 0 : index
    %c0_0 = arith.constant 0 : index
    %c0_1 = arith.constant 0 : index
    %0 = vector.load %arg1[%c0, %c0_0, %c0_1] : memref<2x16x4xf32, #tpu.memory_space<vmem>>, vector<2x16x4xf32>
    %1 = vector.shape_cast %0 : vector<2x16x4xf32> to vector<32x4xf32>
    %c0_2 = arith.constant 0 : index
    %c0_3 = arith.constant 0 : index
    %c0_4 = arith.constant 0 : index
    %2 = vector.load %arg2[%c0_2, %c0_3, %c0_4] : memref<2x16x128xf32, #tpu.memory_space<vmem>>, vector<2x16x128xf32>
    %3 = vector.shape_cast %2 : vector<2x16x128xf32> to vector<32x128xf32>
    %4 = arith.truncf %1 : vector<32x4xf32> to vector<32x4xbf16>
    %c0_5 = arith.constant 0 : index
    %c0_6 = arith.constant 0 : index
    %5 = vector.load %arg3[%c0_5, %c0_6] : memref<4x128xbf16, #tpu.memory_space<vmem>>, vector<4x128xbf16>
    %cst = arith.constant dense<0.000000e+00> : vector<32x128xf32>
    %6 = tpu.matmul %4, %5, %cst {dimension_numbers = #tpu.dot_dimension_numbers<[1], [0], [0], [1], [0, 0, 1, 1], [], []>} : vector<32x4xbf16>, vector<4x128xbf16>, vector<32x128xf32> -> vector<32x128xf32>
    %c0_7 = arith.constant 0 : index
    %c0_8 = arith.constant 0 : index
    %7 = vector.load %arg4[%c0_7, %c0_8] : memref<1x128xf32, #tpu.memory_space<vmem>>, vector<1x128xf32>
    %8 = vector.broadcast %7 : vector<1x128xf32> to vector<32x128xf32>
    %9 = arith.addf %6, %8 : vector<32x128xf32>
    %10 = arith.addf %9, %3 : vector<32x128xf32>
    %11 = vector.shape_cast %10 : vector<32x128xf32> to vector<2x16x128xf32>
    %cst_9 = arith.constant dense<0.000000e+00> : vector<2x128xf32>
    %12 = vector.multi_reduction <add>, %11, %cst_9 [1] : vector<2x16x128xf32> to vector<2x128xf32>
    %cst_10 = arith.constant 1.600000e+01 : f32
    %13 = vector.broadcast %cst_10 : f32 to vector<2x128xf32>
    %14 = arith.divf %12, %13 : vector<2x128xf32>
    %15 = arith.truncf %14 : vector<2x128xf32> to vector<2x128xbf16>
    %c0_11 = arith.constant 0 : index
    %c0_12 = arith.constant 0 : index
    %c0_13 = arith.constant 0 : index
    %16 = vector.load %arg6[%c0_11, %c0_12, %c0_13] : memref<2x128x128xbf16, #tpu.memory_space<vmem>>, vector<1x128x128xbf16>
    %17 = vector.shape_cast %16 : vector<1x128x128xbf16> to vector<128x128xbf16>
    %cst_14 = arith.constant dense<0.000000e+00> : vector<2x128xf32>
    %18 = tpu.matmul %15, %17, %cst_14 {dimension_numbers = #tpu.dot_dimension_numbers<[1], [0], [0], [1], [0, 0, 1, 1], [], []>} : vector<2x128xbf16>, vector<128x128xbf16>, vector<2x128xf32> -> vector<2x128xf32>
    %19 = vector.shape_cast %18 : vector<2x128xf32> to vector<2x1x128xf32>
    %20 = vector.shape_cast %19 : vector<2x1x128xf32> to vector<2x1x128xf32>
    %21 = vector.broadcast %20 : vector<2x1x128xf32> to vector<2x16x128xf32>
    %22 = vector.shape_cast %21 : vector<2x16x128xf32> to vector<32x128xf32>
    %23 = arith.truncf %10 : vector<32x128xf32> to vector<32x128xbf16>
    %c0_15 = arith.constant 0 : index
    %c0_16 = arith.constant 0 : index
    %c0_17 = arith.constant 0 : index
    %24 = vector.load %arg5[%c0_15, %c0_16, %c0_17] : memref<2x128x128xbf16, #tpu.memory_space<vmem>>, vector<1x128x128xbf16>
    %25 = vector.shape_cast %24 : vector<1x128x128xbf16> to vector<128x128xbf16>
    %cst_18 = arith.constant dense<0.000000e+00> : vector<32x128xf32>
    %26 = tpu.matmul %23, %25, %cst_18 {dimension_numbers = #tpu.dot_dimension_numbers<[1], [0], [0], [1], [0, 0, 1, 1], [], []>} : vector<32x128xbf16>, vector<128x128xbf16>, vector<32x128xf32> -> vector<32x128xf32>
    %27 = arith.addf %26, %22 : vector<32x128xf32>
    %c0_19 = arith.constant 0 : index
    %c0_20 = arith.constant 0 : index
    %c0_21 = arith.constant 0 : index
    %28 = vector.load %arg7[%c0_19, %c0_20, %c0_21] : memref<2x1x128xf32, #tpu.memory_space<vmem>>, vector<1x1x128xf32>
    %29 = vector.shape_cast %28 : vector<1x1x128xf32> to vector<1x128xf32>
    %30 = vector.broadcast %29 : vector<1x128xf32> to vector<32x128xf32>
    %31 = arith.addf %27, %30 : vector<32x128xf32>
    %cst_22 = arith.constant 0.000000e+00 : f32
    %32 = vector.broadcast %cst_22 : f32 to vector<32x128xf32>
    %33 = arith.maximumf %31, %32 : vector<32x128xf32>
    %cst_23 = arith.constant 5.000000e-01 : f32
    %34 = vector.broadcast %cst_23 : f32 to vector<32x128xf32>
    %35 = arith.mulf %34, %33 : vector<32x128xf32>
    %36 = arith.addf %10, %35 : vector<32x128xf32>
    %37 = vector.shape_cast %36 : vector<32x128xf32> to vector<2x16x128xf32>
    %cst_24 = arith.constant dense<0.000000e+00> : vector<2x128xf32>
    %38 = vector.multi_reduction <add>, %37, %cst_24 [1] : vector<2x16x128xf32> to vector<2x128xf32>
    %cst_25 = arith.constant 1.600000e+01 : f32
    %39 = vector.broadcast %cst_25 : f32 to vector<2x128xf32>
    %40 = arith.divf %38, %39 : vector<2x128xf32>
    %41 = arith.truncf %40 : vector<2x128xf32> to vector<2x128xbf16>
    %c1 = arith.constant 1 : index
    %c0_26 = arith.constant 0 : index
    %c0_27 = arith.constant 0 : index
    %42 = vector.load %arg6[%c1, %c0_26, %c0_27] : memref<2x128x128xbf16, #tpu.memory_space<vmem>>, vector<1x128x128xbf16>
    %43 = vector.shape_cast %42 : vector<1x128x128xbf16> to vector<128x128xbf16>
    %cst_28 = arith.constant dense<0.000000e+00> : vector<2x128xf32>
    %44 = tpu.matmul %41, %43, %cst_28 {dimension_numbers = #tpu.dot_dimension_numbers<[1], [0], [0], [1], [0, 0, 1, 1], [], []>} : vector<2x128xbf16>, vector<128x128xbf16>, vector<2x128xf32> -> vector<2x128xf32>
    %45 = vector.shape_cast %44 : vector<2x128xf32> to vector<2x1x128xf32>
    %46 = vector.shape_cast %45 : vector<2x1x128xf32> to vector<2x1x128xf32>
    %47 = vector.broadcast %46 : vector<2x1x128xf32> to vector<2x16x128xf32>
    %48 = vector.shape_cast %47 : vector<2x16x128xf32> to vector<32x128xf32>
    %49 = arith.truncf %36 : vector<32x128xf32> to vector<32x128xbf16>
    %c1_29 = arith.constant 1 : index
    %c0_30 = arith.constant 0 : index
    %c0_31 = arith.constant 0 : index
    %50 = vector.load %arg5[%c1_29, %c0_30, %c0_31] : memref<2x128x128xbf16, #tpu.memory_space<vmem>>, vector<1x128x128xbf16>
    %51 = vector.shape_cast %50 : vector<1x128x128xbf16> to vector<128x128xbf16>
    %cst_32 = arith.constant dense<0.000000e+00> : vector<32x128xf32>
    %52 = tpu.matmul %49, %51, %cst_32 {dimension_numbers = #tpu.dot_dimension_numbers<[1], [0], [0], [1], [0, 0, 1, 1], [], []>} : vector<32x128xbf16>, vector<128x128xbf16>, vector<32x128xf32> -> vector<32x128xf32>
    %53 = arith.addf %52, %48 : vector<32x128xf32>
    %c1_33 = arith.constant 1 : index
    %c0_34 = arith.constant 0 : index
    %c0_35 = arith.constant 0 : index
    %54 = vector.load %arg7[%c1_33, %c0_34, %c0_35] : memref<2x1x128xf32, #tpu.memory_space<vmem>>, vector<1x1x128xf32>
    %55 = vector.shape_cast %54 : vector<1x1x128xf32> to vector<1x128xf32>
    %56 = vector.broadcast %55 : vector<1x128xf32> to vector<32x128xf32>
    %57 = arith.addf %53, %56 : vector<32x128xf32>
    %cst_36 = arith.constant 0.000000e+00 : f32
    %58 = vector.broadcast %cst_36 : f32 to vector<32x128xf32>
    %59 = arith.maximumf %57, %58 : vector<32x128xf32>
    %cst_37 = arith.constant 5.000000e-01 : f32
    %60 = vector.broadcast %cst_37 : f32 to vector<32x128xf32>
    %61 = arith.mulf %60, %59 : vector<32x128xf32>
    %62 = arith.addf %36, %61 : vector<32x128xf32>
    %63 = vector.shape_cast %62 : vector<32x128xf32> to vector<2x16x128xf32>
    %c0_38 = arith.constant 0 : index
    %c0_39 = arith.constant 0 : index
    %c0_40 = arith.constant 0 : index
    %64 = vector.load %arg14[%c0_38, %c0_39, %c0_40] : memref<2x16x128xf32, #tpu.memory_space<vmem>>, vector<2x16x128xf32>
    tpu.vector_store %arg14[%c0_38, %c0_39, %c0_40], %63 {strides = array<i32>} : memref<2x16x128xf32, #tpu.memory_space<vmem>>, vector<2x16x128xf32>,
    %65 = vector.shape_cast %62 : vector<32x128xf32> to vector<2x16x128xf32>
    %cst_41 = arith.constant dense<0.000000e+00> : vector<2x128xf32>
    %66 = vector.multi_reduction <add>, %65, %cst_41 [1] : vector<2x16x128xf32> to vector<2x128xf32>
    %67 = vector.shape_cast %66 : vector<2x128xf32> to vector<2x1x128xf32>
    %cst_42 = arith.constant 1.600000e+01 : f32
    %68 = vector.broadcast %cst_42 : f32 to vector<2x1x128xf32>
    %69 = arith.divf %67, %68 : vector<2x1x128xf32>
    %c0_43 = arith.constant 0 : index
    %c0_44 = arith.constant 0 : index
    %c0_45 = arith.constant 0 : index
    %70 = vector.load %arg15[%c0_43, %c0_44, %c0_45] : memref<2x1x128xf32, #tpu.memory_space<vmem>>, vector<2x1x128xf32>
    tpu.vector_store %arg15[%c0_43, %c0_44, %c0_45], %69 {strides = array<i32>} : memref<2x1x128xf32, #tpu.memory_space<vmem>>, vector<2x1x128xf32>,
    %71 = arith.truncf %62 : vector<32x128xf32> to vector<32x128xbf16>
    %c0_46 = arith.constant 0 : index
    %c0_47 = arith.constant 0 : index
    %72 = vector.load %arg8[%c0_46, %c0_47] : memref<128x512xbf16, #tpu.memory_space<vmem>>, vector<128x512xbf16>
    %cst_48 = arith.constant dense<0.000000e+00> : vector<32x512xf32>
    %73 = tpu.matmul %71, %72, %cst_48 {dimension_numbers = #tpu.dot_dimension_numbers<[1], [0], [0], [1], [0, 0, 1, 1], [], []>} : vector<32x128xbf16>, vector<128x512xbf16>, vector<32x512xf32> -> vector<32x512xf32>
    %c0_49 = arith.constant 0 : index
    %c0_50 = arith.constant 0 : index
    %74 = vector.load %arg9[%c0_49, %c0_50] : memref<1x512xf32, #tpu.memory_space<vmem>>, vector<1x512xf32>
    %75 = vector.broadcast %74 : vector<1x512xf32> to vector<32x512xf32>
    %76 = arith.addf %73, %75 : vector<32x512xf32>
    %77 = vector.extract_strided_slice %76 {offsets = [0, 0], sizes = [32, 128], strides = [1, 1]} : vector<32x512xf32> to vector<32x128xf32>
    %cst_51 = arith.constant 0.000000e+00 : f32
    %78 = vector.broadcast %cst_51 : f32 to vector<32x128xf32>
    %79 = arith.maximumf %77, %78 : vector<32x128xf32>
    %cst_52 = arith.constant 5.000000e-01 : f32
    %80 = vector.broadcast %cst_52 : f32 to vector<32x128xf32>
    %81 = arith.mulf %80, %79 : vector<32x128xf32>
    %82 = arith.addf %62, %81 : vector<32x128xf32>
    %83 = arith.truncf %82 : vector<32x128xf32> to vector<32x128xbf16>
    %c0_53 = arith.constant 0 : index
    %c0_54 = arith.constant 0 : index
    %c0_55 = arith.constant 0 : index
    %84 = vector.load %arg10[%c0_53, %c0_54, %c0_55] : memref<4x128x128xbf16, #tpu.memory_space<vmem>>, vector<1x128x128xbf16>
    %85 = vector.shape_cast %84 : vector<1x128x128xbf16> to vector<128x128xbf16>
    %cst_56 = arith.constant dense<0.000000e+00> : vector<32x128xf32>
    %86 = tpu.matmul %83, %85, %cst_56 {dimension_numbers = #tpu.dot_dimension_numbers<[1], [0], [0], [1], [0, 0, 1, 1], [], []>} : vector<32x128xbf16>, vector<128x128xbf16>, vector<32x128xf32> -> vector<32x128xf32>
    %c0_57 = arith.constant 0 : index
    %c0_58 = arith.constant 0 : index
    %c0_59 = arith.constant 0 : index
    %87 = vector.load %arg11[%c0_57, %c0_58, %c0_59] : memref<4x1x128xf32, #tpu.memory_space<vmem>>, vector<1x1x128xf32>
    %88 = vector.shape_cast %87 : vector<1x1x128xf32> to vector<1x128xf32>
    %89 = vector.broadcast %88 : vector<1x128xf32> to vector<32x128xf32>
    %90 = arith.addf %86, %89 : vector<32x128xf32>
    %cst_60 = arith.constant 0.000000e+00 : f32
    %91 = vector.broadcast %cst_60 : f32 to vector<32x128xf32>
    %92 = arith.maximumf %90, %91 : vector<32x128xf32>
    %cst_61 = arith.constant 5.000000e-01 : f32
    %93 = vector.broadcast %cst_61 : f32 to vector<32x128xf32>
    %94 = arith.mulf %93, %92 : vector<32x128xf32>
    %95 = arith.addf %82, %94 : vector<32x128xf32>
    %96 = vector.extract_strided_slice %76 {offsets = [0, 128], sizes = [32, 128], strides = [1, 1]} : vector<32x512xf32> to vector<32x128xf32>
    %cst_62 = arith.constant 0.000000e+00 : f32
    %97 = vector.broadcast %cst_62 : f32 to vector<32x128xf32>
    %98 = arith.maximumf %96, %97 : vector<32x128xf32>
    %cst_63 = arith.constant 5.000000e-01 : f32
    %99 = vector.broadcast %cst_63 : f32 to vector<32x128xf32>
    %100 = arith.mulf %99, %98 : vector<32x128xf32>
    %101 = arith.addf %62, %100 : vector<32x128xf32>
    %102 = arith.truncf %101 : vector<32x128xf32> to vector<32x128xbf16>
    %c1_64 = arith.constant 1 : index
    %c0_65 = arith.constant 0 : index
    %c0_66 = arith.constant 0 : index
    %103 = vector.load %arg10[%c1_64, %c0_65, %c0_66] : memref<4x128x128xbf16, #tpu.memory_space<vmem>>, vector<1x128x128xbf16>
    %104 = vector.shape_cast %103 : vector<1x128x128xbf16> to vector<128x128xbf16>
    %cst_67 = arith.constant dense<0.000000e+00> : vector<32x128xf32>
    %105 = tpu.matmul %102, %104, %cst_67 {dimension_numbers = #tpu.dot_dimension_numbers<[1], [0], [0], [1], [0, 0, 1, 1], [], []>} : vector<32x128xbf16>, vector<128x128xbf16>, vector<32x128xf32> -> vector<32x128xf32>
    %c1_68 = arith.constant 1 : index
    %c0_69 = arith.constant 0 : index
    %c0_70 = arith.constant 0 : index
    %106 = vector.load %arg11[%c1_68, %c0_69, %c0_70] : memref<4x1x128xf32, #tpu.memory_space<vmem>>, vector<1x1x128xf32>
    %107 = vector.shape_cast %106 : vector<1x1x128xf32> to vector<1x128xf32>
    %108 = vector.broadcast %107 : vector<1x128xf32> to vector<32x128xf32>
    %109 = arith.addf %105, %108 : vector<32x128xf32>
    %cst_71 = arith.constant 0.000000e+00 : f32
    %110 = vector.broadcast %cst_71 : f32 to vector<32x128xf32>
    %111 = arith.maximumf %109, %110 : vector<32x128xf32>
    %cst_72 = arith.constant 5.000000e-01 : f32
    %112 = vector.broadcast %cst_72 : f32 to vector<32x128xf32>
    %113 = arith.mulf %112, %111 : vector<32x128xf32>
    %114 = arith.addf %101, %113 : vector<32x128xf32>
    %115 = vector.extract_strided_slice %76 {offsets = [0, 256], sizes = [32, 128], strides = [1, 1]} : vector<32x512xf32> to vector<32x128xf32>
    %cst_73 = arith.constant 0.000000e+00 : f32
    %116 = vector.broadcast %cst_73 : f32 to vector<32x128xf32>
    %117 = arith.maximumf %115, %116 : vector<32x128xf32>
    %cst_74 = arith.constant 5.000000e-01 : f32
    %118 = vector.broadcast %cst_74 : f32 to vector<32x128xf32>
    %119 = arith.mulf %118, %117 : vector<32x128xf32>
    %120 = arith.addf %62, %119 : vector<32x128xf32>
    %121 = arith.truncf %120 : vector<32x128xf32> to vector<32x128xbf16>
    %c2 = arith.constant 2 : index
    %c0_75 = arith.constant 0 : index
    %c0_76 = arith.constant 0 : index
    %122 = vector.load %arg10[%c2, %c0_75, %c0_76] : memref<4x128x128xbf16, #tpu.memory_space<vmem>>, vector<1x128x128xbf16>
    %123 = vector.shape_cast %122 : vector<1x128x128xbf16> to vector<128x128xbf16>
    %cst_77 = arith.constant dense<0.000000e+00> : vector<32x128xf32>
    %124 = tpu.matmul %121, %123, %cst_77 {dimension_numbers = #tpu.dot_dimension_numbers<[1], [0], [0], [1], [0, 0, 1, 1], [], []>} : vector<32x128xbf16>, vector<128x128xbf16>, vector<32x128xf32> -> vector<32x128xf32>
    %c2_78 = arith.constant 2 : index
    %c0_79 = arith.constant 0 : index
    %c0_80 = arith.constant 0 : index
    %125 = vector.load %arg11[%c2_78, %c0_79, %c0_80] : memref<4x1x128xf32, #tpu.memory_space<vmem>>, vector<1x1x128xf32>
    %126 = vector.shape_cast %125 : vector<1x1x128xf32> to vector<1x128xf32>
    %127 = vector.broadcast %126 : vector<1x128xf32> to vector<32x128xf32>
    %128 = arith.addf %124, %127 : vector<32x128xf32>
    %cst_81 = arith.constant 0.000000e+00 : f32
    %129 = vector.broadcast %cst_81 : f32 to vector<32x128xf32>
    %130 = arith.maximumf %128, %129 : vector<32x128xf32>
    %cst_82 = arith.constant 5.000000e-01 : f32
    %131 = vector.broadcast %cst_82 : f32 to vector<32x128xf32>
    %132 = arith.mulf %131, %130 : vector<32x128xf32>
    %133 = arith.addf %120, %132 : vector<32x128xf32>
    %134 = vector.extract_strided_slice %76 {offsets = [0, 384], sizes = [32, 128], strides = [1, 1]} : vector<32x512xf32> to vector<32x128xf32>
    %cst_83 = arith.constant 0.000000e+00 : f32
    %135 = vector.broadcast %cst_83 : f32 to vector<32x128xf32>
    %136 = arith.maximumf %134, %135 : vector<32x128xf32>
    %cst_84 = arith.constant 5.000000e-01 : f32
    %137 = vector.broadcast %cst_84 : f32 to vector<32x128xf32>
    %138 = arith.mulf %137, %136 : vector<32x128xf32>
    %139 = arith.addf %62, %138 : vector<32x128xf32>
    %140 = arith.truncf %139 : vector<32x128xf32> to vector<32x128xbf16>
    %c3 = arith.constant 3 : index
    %c0_85 = arith.constant 0 : index
    %c0_86 = arith.constant 0 : index
    %141 = vector.load %arg10[%c3, %c0_85, %c0_86] : memref<4x128x128xbf16, #tpu.memory_space<vmem>>, vector<1x128x128xbf16>
    %142 = vector.shape_cast %141 : vector<1x128x128xbf16> to vector<128x128xbf16>
    %cst_87 = arith.constant dense<0.000000e+00> : vector<32x128xf32>
    %143 = tpu.matmul %140, %142, %cst_87 {dimension_numbers = #tpu.dot_dimension_numbers<[1], [0], [0], [1], [0, 0, 1, 1], [], []>} : vector<32x128xbf16>, vector<128x128xbf16>, vector<32x128xf32> -> vector<32x128xf32>
    %c3_88 = arith.constant 3 : index
    %c0_89 = arith.constant 0 : index
    %c0_90 = arith.constant 0 : index
    %144 = vector.load %arg11[%c3_88, %c0_89, %c0_90] : memref<4x1x128xf32, #tpu.memory_space<vmem>>, vector<1x1x128xf32>
    %145 = vector.shape_cast %144 : vector<1x1x128xf32> to vector<1x128xf32>
    %146 = vector.broadcast %145 : vector<1x128xf32> to vector<32x128xf32>
    %147 = arith.addf %143, %146 : vector<32x128xf32>
    %cst_91 = arith.constant 0.000000e+00 : f32
    %148 = vector.broadcast %cst_91 : f32 to vector<32x128xf32>
    %149 = arith.maximumf %147, %148 : vector<32x128xf32>
    %cst_92 = arith.constant 5.000000e-01 : f32
    %150 = vector.broadcast %cst_92 : f32 to vector<32x128xf32>
    %151 = arith.mulf %150, %149 : vector<32x128xf32>
    %152 = arith.addf %139, %151 : vector<32x128xf32>
    %153 = tpu.concatenate %95, %114, %133, %152 in 1 : vector<32x128xf32>, vector<32x128xf32>, vector<32x128xf32>, vector<32x128xf32> -> vector<32x512xf32>
    %154 = arith.truncf %153 : vector<32x512xf32> to vector<32x512xbf16>
    %c0_93 = arith.constant 0 : index
    %c0_94 = arith.constant 0 : index
    %155 = vector.load %arg12[%c0_93, %c0_94] : memref<512x128xbf16, #tpu.memory_space<vmem>>, vector<512x128xbf16>
    %cst_95 = arith.constant dense<0.000000e+00> : vector<32x128xf32>
    %156 = tpu.matmul %154, %155, %cst_95 {dimension_numbers = #tpu.dot_dimension_numbers<[1], [0], [0], [1], [0, 0, 1, 1], [], []>} : vector<32x512xbf16>, vector<512x128xbf16>, vector<32x128xf32> -> vector<32x128xf32>
    %c0_96 = arith.constant 0 : index
    %c0_97 = arith.constant 0 : index
    %157 = vector.load %arg13[%c0_96, %c0_97] : memref<1x128xf32, #tpu.memory_space<vmem>>, vector<1x128xf32>
    %158 = vector.broadcast %157 : vector<1x128xf32> to vector<32x128xf32>
    %159 = arith.addf %156, %158 : vector<32x128xf32>
    %160 = vector.shape_cast %159 : vector<32x128xf32> to vector<2x16x128xf32>
    %c0_98 = arith.constant 0 : index
    %c0_99 = arith.constant 0 : index
    %c0_100 = arith.constant 0 : index
    %161 = vector.load %arg16[%c0_98, %c0_99, %c0_100] : memref<2x16x128xf32, #tpu.memory_space<vmem>>, vector<2x16x128xf32>
    tpu.vector_store %arg16[%c0_98, %c0_99, %c0_100], %160 {strides = array<i32>} : memref<2x16x128xf32, #tpu.memory_space<vmem>>, vector<2x16x128xf32>,
    return
  }
  func.func @transform_0(%arg0: i32) -> (i32, i32, i32) {
    %c0_i32 = arith.constant 0 : i32
    %c0_i32_0 = arith.constant 0 : i32
    %c0_i32_1 = arith.constant 0 : i32
    return %arg0, %c0_i32, %c0_i32_0 : i32, i32, i32
  }
  func.func @transform_1(%arg0: i32) -> (i32, i32, i32) {
    %c0_i32 = arith.constant 0 : i32
    %c0_i32_0 = arith.constant 0 : i32
    %c0_i32_1 = arith.constant 0 : i32
    return %arg0, %c0_i32, %c0_i32_0 : i32, i32, i32
  }
  func.func @transform_2(%arg0: i32) -> (i32, i32) {
    %c0_i32 = arith.constant 0 : i32
    %c0_i32_0 = arith.constant 0 : i32
    %c0_i32_1 = arith.constant 0 : i32
    return %c0_i32, %c0_i32_0 : i32, i32
  }
  func.func @transform_3(%arg0: i32) -> (i32, i32) {
    %c0_i32 = arith.constant 0 : i32
    %c0_i32_0 = arith.constant 0 : i32
    %c0_i32_1 = arith.constant 0 : i32
    return %c0_i32, %c0_i32_0 : i32, i32
  }
  func.func @transform_4(%arg0: i32) -> (i32, i32, i32) {
    %c0_i32 = arith.constant 0 : i32
    %c0_i32_0 = arith.constant 0 : i32
    %c0_i32_1 = arith.constant 0 : i32
    %c0_i32_2 = arith.constant 0 : i32
    return %c0_i32, %c0_i32_0, %c0_i32_1 : i32, i32, i32
  }
  func.func @transform_5(%arg0: i32) -> (i32, i32, i32) {
    %c0_i32 = arith.constant 0 : i32
    %c0_i32_0 = arith.constant 0 : i32
    %c0_i32_1 = arith.constant 0 : i32
    %c0_i32_2 = arith.constant 0 : i32
    return %c0_i32, %c0_i32_0, %c0_i32_1 : i32, i32, i32
  }
  func.func @transform_6(%arg0: i32) -> (i32, i32, i32) {
    %c0_i32 = arith.constant 0 : i32
    %c0_i32_0 = arith.constant 0 : i32
    %c0_i32_1 = arith.constant 0 : i32
    %c0_i32_2 = arith.constant 0 : i32
    return %c0_i32, %c0_i32_0, %c0_i32_1 : i32, i32, i32
  }
  func.func @transform_7(%arg0: i32) -> (i32, i32) {
    %c0_i32 = arith.constant 0 : i32
    %c0_i32_0 = arith.constant 0 : i32
    %c0_i32_1 = arith.constant 0 : i32
    return %c0_i32, %c0_i32_0 : i32, i32
  }
  func.func @transform_8(%arg0: i32) -> (i32, i32) {
    %c0_i32 = arith.constant 0 : i32
    %c0_i32_0 = arith.constant 0 : i32
    %c0_i32_1 = arith.constant 0 : i32
    return %c0_i32, %c0_i32_0 : i32, i32
  }
  func.func @transform_9(%arg0: i32) -> (i32, i32, i32) {
    %c0_i32 = arith.constant 0 : i32
    %c0_i32_0 = arith.constant 0 : i32
    %c0_i32_1 = arith.constant 0 : i32
    %c0_i32_2 = arith.constant 0 : i32
    return %c0_i32, %c0_i32_0, %c0_i32_1 : i32, i32, i32
  }
  func.func @transform_10(%arg0: i32) -> (i32, i32, i32) {
    %c0_i32 = arith.constant 0 : i32
    %c0_i32_0 = arith.constant 0 : i32
    %c0_i32_1 = arith.constant 0 : i32
    %c0_i32_2 = arith.constant 0 : i32
    return %c0_i32, %c0_i32_0, %c0_i32_1 : i32, i32, i32
  }
  func.func @transform_11(%arg0: i32) -> (i32, i32) {
    %c0_i32 = arith.constant 0 : i32
    %c0_i32_0 = arith.constant 0 : i32
    %c0_i32_1 = arith.constant 0 : i32
    return %c0_i32, %c0_i32_0 : i32, i32
  }
  func.func @transform_12(%arg0: i32) -> (i32, i32) {
    %c0_i32 = arith.constant 0 : i32
    %c0_i32_0 = arith.constant 0 : i32
    %c0_i32_1 = arith.constant 0 : i32
    return %c0_i32, %c0_i32_0 : i32, i32
  }
  func.func @transform_13(%arg0: i32) -> (i32, i32, i32) {
    %c0_i32 = arith.constant 0 : i32
    %c0_i32_0 = arith.constant 0 : i32
    %c0_i32_1 = arith.constant 0 : i32
    return %arg0, %c0_i32, %c0_i32_0 : i32, i32, i32
  }
  func.func @transform_14(%arg0: i32) -> (i32, i32, i32) {
    %c0_i32 = arith.constant 0 : i32
    %c0_i32_0 = arith.constant 0 : i32
    %c0_i32_1 = arith.constant 0 : i32
    return %arg0, %c0_i32, %c0_i32_0 : i32, i32, i32
  }
  func.func @transform_15(%arg0: i32) -> (i32, i32, i32) {
    %c0_i32 = arith.constant 0 : i32
    %c0_i32_0 = arith.constant 0 : i32
    %c0_i32_1 = arith.constant 0 : i32
    return %arg0, %c0_i32, %c0_i32_0 : i32, i32, i32
  }
}

</mosaic_0001>

<bundles_post_ra>
// kernel: tpu_custom_call.1
= control target key start
LH: loop header
LB: loop body
LE: loop exit
PB: predicated region body
PF: predicated region fallthrough
CT: control target
= control target key end

     0   :  { %21 = vsyncpa [#allocation3], 0  ;;  %s3115_s0 = inlined_call_operand.vmem [shape: f32[2,16,4], index: 0, kind: input, shape index: {}]   ;;  %s3116_s1 = inlined_call_operand.vmem [shape: f32[2,16,128], index: 1, kind: input, shape index: {}]   ;;  %s3117_s2 = inlined_call_operand.hbm [shape: bf16[4,128], index: 2, kind: input, shape index: {}]   ;;  %s3118_s3 = inlined_call_operand.hbm [shape: f32[1,128], index: 3, kind: input, shape index: {}]   ;;  %s3119_s4 = inlined_call_operand.hbm [shape: bf16[2,128,128], index: 4, kind: input, shape index: {}]   ;;  %s3120_s5 = inlined_call_operand.hbm [shape: bf16[2,128,128], index: 5, kind: input, shape index: {}]   ;;  %s3121_s6 = inlined_call_operand.vmem [shape: f32[2,1,128], index: 6, kind: input, shape index: {}]   ;;  %s3122_s7 = inlined_call_operand.hbm [shape: bf16[128,512], index: 7, kind: input, shape index: {}]   ;;  %s3123_s8 = inlined_call_operand.vmem [shape: f32[1,512], index: 8, kind: input, shape index: {}]   ;;  %s3124_s9 = inlined_call_operand.hbm [shape: bf16[4,128,128], index: 9, kind: input, shape index: {}]   ;;  %s3125_s10 = inlined_call_operand.vmem [shape: f32[4,1,128], index: 10, kind: input, shape index: {}]   ;;  %s3126_s11 = inlined_call_operand.hbm [shape: bf16[512,128], index: 11, kind: input, shape index: {}]   ;;  %s3127_s12 = inlined_call_operand.vmem [shape: f32[1,128], index: 12, kind: input, shape index: {}]   ;;  %s3128_s13 = inlined_call_operand.hbm [shape: f32[2,16,128], index: 13, kind: output, shape index: {0}]   ;;  %s3129_s14 = inlined_call_operand.hbm [shape: f32[2,1,128], index: 14, kind: output, shape index: {1}]   ;;  %s3130_s15 = inlined_call_operand.hbm [shape: f32[2,16,128], index: 15, kind: output, shape index: {2}]  }
   0x1   :  { %22 = vsyncpa [#allocation6], 0 }
   0x2   :  { %23 = vsyncpa [#allocation9], 0 }
   0x3   :  { %24 = vsyncpa [#allocation12], 0 }
   0x4   :  { %25 = vsyncpa [#allocation4], 0  ;;  %s47_s20 = sshll.u32 %s3118_s3, 4  ;;  %s48_s20 = int_to_ptr.hbm [resolvable:$true] %s47_s20 }
   0x5   :  { %26 = vsyncpa [#allocation16], 0  ;;  %s2732_s21 = smov [#allocation5]   ;;  %s70_s25 = sshll.u32 %s3120_s5, 4  ;;  %s71_s25 = int_to_ptr.hbm [resolvable:$true] %s70_s25 }
   0x6   :  { %s49_s22 = sshll.u32 %s2732_s21, 4  ;;  %s2733_s26 = smov [#allocation8]   ;;  %s50_s22 = int_to_ptr.vmem [resolvable:$true] %s49_s22 }
   0x7   :  { %52 = dma.hbm_to_vmem [thread:$0]  %s48_s20, 16, %s50_s22, [#allocation6]  }
   0x8   :  { %s72_s27 = sshll.u32 %s2733_s26, 4  ;;  %s100_s30 = sshll.u32 %s3124_s9, 4  ;;  %s73_s27 = int_to_ptr.vmem [resolvable:$true] %s72_s27  ;;  %s101_s30 = int_to_ptr.hbm [resolvable:$true] %s100_s30 }
   0x9   :  { %s2734_s3 = smov 64   ;;  %s2735_s16 = smov 4  }
   0xa   :  { %78 = dma.hbm_to_vmem [thread:$0]  %s71_s25, 2048, %s73_s27, [#allocation9], %s2734_s3, %s2734_s3, %s2735_s16  }
   0xb   :  { %s36_s19 = sshll.u32 %s3117_s2, 4  ;;  %s2736_s5 = smov [#allocation11]   ;;  %s37_s19 = int_to_ptr.hbm [resolvable:$true] %s36_s19 }
   0xc   :  { %s102_s20 = sshll.u32 %s2736_s5, 4  ;;  %s2737_s9 = smov [#allocation2]   ;;  %s103_s20 = int_to_ptr.vmem [resolvable:$true] %s102_s20 }
   0xd   :  { %108 = dma.hbm_to_vmem [thread:$0]  %s101_s30, 4096, %s103_s20, [#allocation12], %s2734_s3, %s2734_s3, %s2735_s16  }
   0xe   :  { %s38_s21 = sshll.u32 %s2737_s9, 4  ;;  %s57_s24 = sshll.u32 %s3119_s4, 4  ;;  %s39_s21 = int_to_ptr.vmem [resolvable:$true] %s38_s21  ;;  %s58_s24 = int_to_ptr.hbm [resolvable:$true] %s57_s24 }
   0xf   :  { %41 = dma.hbm_to_vmem [thread:$0]  %s37_s19, 32, %s39_s21, [#allocation3]  }
  0x10   :  { %s85_s2 = sshll.u32 %s3122_s7, 4  ;;  %s2738_s27 = smov [#allocation7]   ;;  %s86_s2 = int_to_ptr.hbm [resolvable:$true] %s85_s2 }
  0x11   :  { %s59_s28 = sshll.u32 %s2738_s27, 4  ;;  %s2739_s29 = smov [#allocation10]   ;;  %s60_s28 = int_to_ptr.vmem [resolvable:$true] %s59_s28 }
  0x12   :  { %65 = dma.hbm_to_vmem [thread:$0]  %s58_s24, 2048, %s60_s28, [#allocation6], %s2734_s3, %s2734_s3, %s2735_s16  }
  0x13   :  { %s87_s30 = sshll.u32 %s2739_s29, 4  ;;  %s2740_s17 = smov 256   ;;  %s88_s30 = int_to_ptr.vmem [resolvable:$true] %s87_s30 }
  0x14   :  { %s2741_s4 = smov 16   ;;  %s115_s5 = sshll.u32 %s3126_s11, 4  ;;  %s116_s5 = int_to_ptr.hbm [resolvable:$true] %s115_s5 }
  0x15   :  { %93 = dma.hbm_to_vmem [thread:$0]  %s86_s2, 4096, %s88_s30, [#allocation9], %s2740_s17, %s2740_s17, %s2741_s4  }
  0x16   :  { %s2742_s7 = smov [#allocation13]  }
  0x17   :  { %s117_s20 = sshll.u32 %s2742_s7, 4  ;;  %s118_s20 = int_to_ptr.vmem [resolvable:$true] %s117_s20 }
  0x18   :  { %123 = dma.hbm_to_vmem [thread:$0]  %s116_s5, 4096, %s118_s20, [#allocation12], %s2734_s3, %s2734_s3, %s2735_s16  }
  0x19   :  { %2720 = dma.done.wait [#allocation3], 32  }
  0x1a   :  { %2721 = vsyncadd [#allocation3], 4294967264 }
  0x1b   :  { %2722 = dma.done.wait [#allocation6], 2064  }
  0x1c   :  { %2723 = vsyncadd [#allocation6], 4294965232 }
  0x1d   :  { %2724 = dma.done.wait [#allocation9], 6144  }
  0x1e   :  { %2725 = vsyncadd [#allocation9], 4294961152 }
  0x1f   :  { %2726 = dma.done.wait [#allocation12], 8192  }
  0x20   :  { %2727 = vsyncadd [#allocation12], 4294959104  ;;  %vm177_vm0 = vcmask 1041408   ;;  %v165_v0 = vld [vmem:[#allocation2] sm:$0x3]  ;;  %v156_v2 = vld [vmem:[%s3115_s0 + $0x8] sm:$0xff] }
  0x21   :  { %v155_v1 = vld [vmem:[%s3115_s0] sm:$0xff]  ;;  %v179_v3 = vsel %vm177_vm0, %v165_v0, 0  ;;  %vm170_vm1 = vcmask 31744   ;;  %v2338_v6 = vld [vmem:[#allocation7 + $0x30] sm:$0xff]  ;;  %v2337_v7 = vld [vmem:[#allocation7 + $0x28] sm:$0xff]  ;;  %v2743_v32 = vmov 16.0  }
  0x22   :  { %v163_v4 = vpack.c.bf16 %v156_v2, %v155_v1  ;;  %v2339_v5 = vld [vmem:[#allocation7 + $0x38] sm:$0xff]  ;;  %188 = vmatpush.bf16.msra.mxu0 %v179_v3  ;;  %v2336_v8 = vld [vmem:[#allocation7 + $0x20] sm:$0xff]  ;;  %v157_v9 = vld [vmem:[%s3115_s0 + $0x10] sm:$0xff]  ;;  %2478 = vrcp.f32 %v2743_v32  ;;  %vm249_vm3 = vcmask 1041409   ;;  %s2745_s25 = smov 1   ;;  %s2746_s26 = smov [#allocation14]  }
  0x23   :  { %386 = vmatpush.bf16.msra.mxu2 %v2339_v5  ;;  %v158_v10 = vld [vmem:[%s3115_s0 + $0x18] sm:$0xff]  ;;  %v2333_v14 = vld [vmem:[#allocation7 + $0x8] sm:$0xff]  ;;  %v2332_v15 = vld [vmem:[#allocation7] sm:$0xff]  ;;  %s1768_s0 = sshll.u32 %s3129_s14, 4  ;;  %s1753_s2 = sshll.u32 %s2746_s26, 4  ;;  %s1769_s0 = int_to_ptr.hbm [resolvable:$true] %s1768_s0  ;;  %s1754_s2 = int_to_ptr.vmem [resolvable:$true] %s1753_s2 }
  0x24   :  { %v164_v11 = vpack.c.bf16 %v158_v10, %v157_v9  ;;  %v2335_v12 = vld [vmem:[#allocation7 + $0x18] sm:$0xff]  ;;  %v2334_v13 = vld [vmem:[#allocation7 + $0x10] sm:$0xff]  ;;  %v2329_v18 = vld [vmem:[#allocation8 + $0x28] sm:$0xff]  ;;  %s1755_s29 = sshll.u32 %s3128_s13, 4  ;;  %s2747_s30 = smov 128   ;;  %s1756_s29 = int_to_ptr.hbm [resolvable:$true] %s1755_s29 }
  0x25   :  { %1806 = vmatmul.msk.bf16.vlgmr.msra.gmra.mxu0 %vm170_vm1, %v163_v4  ;;  %v2331_v16 = vld [vmem:[#allocation8 + $0x38] sm:$0xff]  ;;  %v2330_v17 = vld [vmem:[#allocation8 + $0x30] sm:$0xff]  ;;  %v2328_v19 = vld [vmem:[#allocation8 + $0x20] sm:$0xff]  ;;  %s1781_s19 = sshll.u32 %s3130_s15, 4  ;;  %s1782_s19 = int_to_ptr.hbm [resolvable:$true] %s1781_s19 }
  0x26   :  { %301 = vmatpush.bf16.msra.mxu1 %v2331_v16  ;;  %v2470_v21 = vld [vmem:[#allocation5] ss:$0 sm:$0xff]  ;;  %v2326_v23 = vld [vmem:[#allocation8 + $0x10] sm:$0xff]  ;;  %v160_v26 = vld [vmem:[%s3116_s1 + $0x8] sm:$0xff] }
  0x27   :  { %387 = vmatpush.bf16.msra.mxu2 %v2338_v6  ;;  %v2327_v22 = vld [vmem:[#allocation8 + $0x18] sm:$0xff]  ;;  %v2325_v29 = vld [vmem:[#allocation8 + $0x8] sm:$0xff]  ;;  %v2324_v35 = vld [vmem:[#allocation8] sm:$0xff] }
  0x28   :  { %v159_v25 = vld [vmem:[%s3116_s1] sm:$0xff]  ;;  %v2479_v38 = vpop.eup %2478  ;;  %v161_v43 = vld [vmem:[%s3116_s1 + $0x10] sm:$0xff]  ;;  %v162_v44 = vld [vmem:[%s3116_s1 + $0x18] sm:$0xff]  ;;  %s2748_s1 = smov 8  }
  0x29   :  { %v219_v40 = vmul.f32 16.0, %v2479_v38  ;;  %vm223_vm2 = vweird.f32 %v2479_v38  ;;  %v2354_v9 = vld [vmem:[#allocation7 + $0x70] sm:$0xff]  ;;  %v2353_v10 = vld [vmem:[#allocation7 + $0x68] sm:$0xff]  ;;  %v2471_v32 = vld [vmem:[%s3121_s6] ss:$0 sm:$0xff] }
  0x2a   :  { %302 = vmatpush.bf16.msra.mxu1 %v2330_v17  ;;  %v2349_v16 = vld [vmem:[#allocation7 + $0x48] sm:$0xff]  ;;  %v2346_v17 = vld [vmem:[#allocation8 + $0x70] sm:$0xff] }
  0x2b   :  { %388 = vmatpush.bf16.msra.mxu2 %v2337_v7  ;;  %v220_v46 = vsub.f32 1.0, %v219_v40 }
  0x2d   :  { %v221_v51 = vmul.f32 %v2479_v38, %v220_v46 }
  0x2e   :  { %303 = vmatpush.bf16.msra.mxu1 %v2329_v18  ;;  %v2348_v18 = vld [vmem:[#allocation7 + $0x40] sm:$0xff] }
  0x2f   :  { %389 = vmatpush.bf16.msra.mxu2 %v2336_v8  ;;  %v222_v56 = vadd.f32 %v2479_v38, %v221_v51  ;;  %v2355_v8 = vld [vmem:[#allocation7 + $0x78] sm:$0xff] }
  0x30   :  { %601 = vmatpush.bf16.msrb.mxu0 %v2355_v8 }
  0x31   :  { %v2904_v60 = vsel %vm223_vm2, %v2479_v38, %v222_v56 }
  0x32   :  { %304 = vmatpush.bf16.msra.mxu1 %v2328_v19  ;;  %v2345_v19 = vld [vmem:[#allocation8 + $0x68] sm:$0xff] }
  0x33   :  { %390 = vmatpush.bf16.msra.mxu2 %v2335_v12  ;;  %v2351_v12 = vld [vmem:[#allocation7 + $0x58] sm:$0xff] }
  0x34   :  { %602 = vmatpush.bf16.msrb.mxu0 %v2354_v9 }
  0x35   :  { %1807 = vmatmul.msk.bf16.gmra.mxu0 %vm170_vm1, %v164_v11  ;;  %v2352_v11 = vld [vmem:[#allocation7 + $0x60] sm:$0xff] }
  0x36   :  { %305 = vmatpush.bf16.msra.mxu1 %v2327_v22  ;;  %v2343_v22 = vld [vmem:[#allocation8 + $0x58] sm:$0xff] }
  0x37   :  { %391 = vmatpush.bf16.msra.mxu2 %v2334_v13  ;;  %v2350_v13 = vld [vmem:[#allocation7 + $0x50] sm:$0xff] }
  0x38   :  { %603 = vmatpush.bf16.msrb.mxu0 %v2353_v10 }
  0x3a   :  { %306 = vmatpush.bf16.msra.mxu1 %v2326_v23  ;;  %v2342_v23 = vld [vmem:[#allocation8 + $0x50] sm:$0xff] }
  0x3b   :  { %392 = vmatpush.bf16.msra.mxu2 %v2333_v14  ;;  %v2347_v14 = vld [vmem:[#allocation8 + $0x78] sm:$0xff] }
  0x3c   :  { %604 = vmatpush.bf16.msrb.mxu0 %v2352_v11  ;;  %515 = vmatpush.bf16.msra.mxu3 %v2347_v14 }
  0x3e   :  { %307 = vmatpush.bf16.msra.mxu1 %v2325_v29 }
  0x3f   :  { %393 = vmatpush.bf16.msra.mxu2 %v2332_v15 }
  0x40   :  { %605 = vmatpush.bf16.msrb.mxu0 %v2351_v12  ;;  %516 = vmatpush.bf16.msra.mxu3 %v2346_v17  ;;  %v2051_v17 = vld [vmem:[#allocation10 + $0xe0] sm:$0xf] }
  0x42   :  { %308 = vmatpush.bf16.msra.mxu1 %v2324_v35 }
  0x44   :  { %606 = vmatpush.bf16.msrb.mxu0 %v2350_v13  ;;  %517 = vmatpush.bf16.msra.mxu3 %v2345_v19  ;;  %v2386_v19 = vld [vmem:[#allocation10 + $0xec] sm:$0xf0] }
  0x48   :  { %607 = vmatpush.bf16.msrb.mxu0 %v2349_v16  ;;  %v2053_v16 = vld [vmem:[#allocation10 + $0xf0] sm:$0xf0] }
  0x4c   :  { %608 = vmatpush.bf16.msrb.mxu0 %v2348_v18 }
  0xa2   :  { %v190_v20 = vpop.f32.mrf.mxu0 }
  0xa3   :  { %v191_v24 = vadd.f32 %v2470_v21, %v190_v20  ;;  %v2344_v20 = vld [vmem:[#allocation8 + $0x60] sm:$0xff] }
  0xa4   :  { %518 = vmatpush.bf16.msra.mxu3 %v2344_v20  ;;  %v2059_v20 = vld [vmem:[#allocation10 + $0xe8] sm:$0xf] }
  0xa5   :  { %v2882_v30 = vadd.f32 %v191_v24, %v159_v25  ;;  %v2341_v25 = vld [vmem:[#allocation8 + $0x48] sm:$0xff] }
  0xa8   :  { %519 = vmatpush.bf16.msra.mxu3 %v2343_v22  ;;  %v2052_v22 = vor.u32 %v2386_v19, %v2051_v17  ;;  %v1973_v17 = vld [vmem:[#allocation10 + $0x50] sm:$0xf0] }
  0xaa   :  { %v192_v27 = vpop.f32.mrf.mxu0  ;;  %867 = vmatpush.bf16.msrb.mxu1 %v2052_v22 }
  0xab   :  { %v193_v28 = vadd.f32 %v2470_v21, %v192_v27 }
  0xac   :  { %520 = vmatpush.bf16.msra.mxu3 %v2342_v23 }
  0xad   :  { %v2884_v31 = vadd.f32 %v193_v28, %v160_v26  ;;  %v2340_v26 = vld [vmem:[#allocation8 + $0x40] sm:$0xff] }
  0xaf   :  { %v204_v33 = vadd.f32 %v2884_v31, %v2882_v30  ;;  %v320_v34 = vpack.c.bf16 %v2884_v31, %v2882_v30 }
  0xb0   :  { %521 = vmatpush.bf16.msra.mxu3 %v2341_v25  ;;  %v2061_v25 = vld [vmem:[#allocation10 + $0xf8] sm:$0xf0] }
  0xb1   :  { %v205_v36 = vrot.slane %v204_v33, 4  ;;  %394 = vmatmul.bf16.vlgmr.msra.gmra.mxu2 %v320_v34 }
  0xb2   :  { %v195_v37 = vpop.f32.mrf.mxu0 }
  0xb3   :  { %v206_v39 = vadd.f32 %v205_v36, %v204_v33  ;;  %v196_v42 = vadd.f32 %v2470_v21, %v195_v37 }
  0xb4   :  { %522 = vmatpush.bf16.msra.mxu3 %v2340_v26 }
  0xb5   :  { %v207_v41 = vrot.slane %v206_v39, 2  ;;  %v2896_v49 = vadd.f32 %v196_v42, %v161_v43 }
  0xb7   :  { %v208_v48 = vadd.f32 %v207_v41, %v206_v39 }
  0xb9   :  { %v209_v55 = vrot.slane %v208_v48, 1 }
  0xba   :  { %v197_v45 = vpop.f32.mrf.mxu0 }
  0xbb   :  { %v198_v47 = vadd.f32 %v2470_v21, %v197_v45  ;;  %v210_v59 = vadd.f32 %v209_v55, %v208_v48 }
  0xbd   :  { %v2898_v50 = vadd.f32 %v198_v47, %v162_v44  ;;  %v225_v63 = vmul.f32 %v2904_v60, %v210_v59 }
  0xbf   :  { %v211_v52 = vadd.f32 %v2898_v50, %v2896_v49  ;;  %v321_v53 = vpack.c.bf16 %v2898_v50, %v2896_v49  ;;  %v227_v2 = vpack.c.bf16 %v225_v63, %v225_v63 }
  0xc1   :  { %v212_v54 = vrot.slane %v211_v52, 4  ;;  %399 = vmatmul.bf16.gmra.mxu2 %v321_v53  ;;  %v247_v4 = vunpack.c.l.b16 %v227_v2 }
  0xc3   :  { %v213_v57 = vadd.f32 %v212_v54, %v211_v52 }
  0xc5   :  { %v214_v58 = vrot.slane %v213_v57, 2 }
  0xc7   :  { %v215_v61 = vadd.f32 %v214_v58, %v213_v57 }
  0xc9   :  { %v216_v62 = vrot.slane %v215_v61, 1 }
  0xcb   :  { %v217_v0 = vadd.f32 %v216_v62, %v215_v61 }
  0xcd   :  { %v226_v1 = vmul.f32 %v2904_v60, %v217_v0 }
  0xcf   :  { %v228_v3 = vpack.c.bf16 %v226_v1, %v226_v1 }
  0xd1   :  { %v248_v5 = vunpack.c.l.b16 %v228_v3 }
  0xd3   :  { %v250_v6 = vsel %vm249_vm3, %v248_v5, %v247_v4 }
  0xd4   :  { %v251_v7 = vpack.c.b16 %v250_v6, %v250_v6 }
  0xd6   :  { %309 = vmatmul.bf16.vlgmr.msra.gmra.mxu1 %v251_v7 }
 0x134   :  { %v395_v15 = vpop.f32.mrf.mxu2 }
 0x13c   :  { %v397_v21 = vpop.f32.mrf.mxu2 }
 0x144   :  { %v400_v24 = vpop.f32.mrf.mxu2 }
 0x14c   :  { %v402_v36 = vpop.f32.mrf.mxu2 }
 0x153   :  { %v310_v27 = vpop.f32.mrf.mxu1 }
 0x154   :  { %v315_v28 = vrot.slane %v310_v27, 1  ;;  %v316_v29 = vperm.slane %v310_v27, 0  ;;  %v2380_v27 = vld [vmem:[#allocation10 + $0xc4] sm:$0xf] }
 0x156   :  { %v317_v33 = vperm.slane %v315_v28, 0  ;;  %v396_v34 = vadd.f32 %v395_v15, %v316_v29  ;;  %v398_v35 = vadd.f32 %v397_v21, %v316_v29  ;;  %v2384_v15 = vld [vmem:[#allocation10 + $0xe4] sm:$0xf]  ;;  %v2387_v21 = vld [vmem:[#allocation10 + $0xf4] sm:$0xf0] }
 0x157   :  { %v2056_v18 = vor.u32 %v2384_v15, %v2053_v16  ;;  %v2060_v23 = vor.u32 %v2387_v21, %v2059_v20  ;;  %v2037_v28 = vld [vmem:[#allocation10 + $0xd0] sm:$0xf0]  ;;  %v2035_v29 = vld [vmem:[#allocation10 + $0xc0] sm:$0xf]  ;;  %v2364_v16 = vld [vmem:[#allocation10 + $0x44] sm:$0xf] }
 0x158   :  { %v401_v37 = vadd.f32 %v400_v24, %v317_v33  ;;  %v403_v38 = vadd.f32 %v402_v36, %v317_v33  ;;  %v409_v39 = vadd.f32 %v2471_v32, %v396_v34  ;;  %v410_v40 = vadd.f32 %v2471_v32, %v398_v35  ;;  %v2385_v24 = vld [vmem:[#allocation10 + $0xec] sm:$0xf]  ;;  %v2382_v33 = vld [vmem:[#allocation10 + $0xcc] sm:$0xf0]  ;;  %v2043_v34 = vld [vmem:[#allocation10 + $0xc8] sm:$0xf] }
 0x159   :  { %886 = vmatpush.bf16.msrb.mxu2 %v2056_v18  ;;  %v2064_v26 = vor.u32 %v2385_v24, %v2061_v25  ;;  %905 = vmatpush.bf16.msrb.mxu3 %v2060_v23  ;;  %v2383_v35 = vld [vmem:[#allocation10 + $0xd4] sm:$0xf0]  ;;  %v2036_v36 = vor.u32 %v2382_v33, %v2035_v29  ;;  %v1971_v18 = vld [vmem:[#allocation10 + $0x40] sm:$0xf]  ;;  %v1976_v19 = vor.u32 %v2364_v16, %v1973_v17  ;;  %v2366_v20 = vld [vmem:[#allocation10 + $0x4c] sm:$0xf0] }
 0x15a   :  { %v411_v41 = vadd.f32 %v2471_v32, %v401_v37  ;;  %v412_v42 = vadd.f32 %v2471_v32, %v403_v38  ;;  %v413_v43 = vmax.f32 %v409_v39, 0.0  ;;  %v414_v44 = vmax.f32 %v410_v40, 0.0  ;;  %v2381_v38 = vld [vmem:[#allocation10 + $0xcc] sm:$0xf]  ;;  %v2045_v39 = vld [vmem:[#allocation10 + $0xd8] sm:$0xf0] }
 0x15b   :  { %v312_v45 = vpop.f32.mrf.mxu1  ;;  %924 = vmatpush.bf16.msra.mxu0 %v2064_v26  ;;  %v2040_v32 = vor.u32 %v2380_v27, %v2037_v28  ;;  %v2044_v37 = vor.u32 %v2383_v35, %v2043_v34  ;;  %v2376_v40 = vld [vmem:[#allocation10 + $0xa4] sm:$0xf]  ;;  %868 = vmatpush.bf16.msrb.mxu1 %v2036_v36  ;;  %v1979_v21 = vld [vmem:[#allocation10 + $0x48] sm:$0xf]  ;;  %v1972_v22 = vor.u32 %v2366_v20, %v1971_v18  ;;  %v2367_v23 = vld [vmem:[#allocation10 + $0x54] sm:$0xf0] }
 0x15c   :  { %v415_v46 = vmax.f32 %v411_v41, 0.0  ;;  %v416_v47 = vmax.f32 %v412_v42, 0.0  ;;  %v417_v48 = vmul.f32 0.5, %v413_v43  ;;  %v418_v51 = vmul.f32 0.5, %v414_v44  ;;  %v2021_v42 = vld [vmem:[#allocation10 + $0xb0] sm:$0xf0] }
 0x15d   :  { %887 = vmatpush.bf16.msrb.mxu2 %v2040_v32  ;;  %v2048_v41 = vor.u32 %v2381_v38, %v2045_v39  ;;  %v2019_v43 = vld [vmem:[#allocation10 + $0xa0] sm:$0xf]  ;;  %v2378_v44 = vld [vmem:[#allocation10 + $0xac] sm:$0xf0]  ;;  %906 = vmatpush.bf16.msrb.mxu3 %v2044_v37  ;;  %v2024_v45 = vor.u32 %v2376_v40, %v2021_v42  ;;  %v2365_v24 = vld [vmem:[#allocation10 + $0x4c] sm:$0xf]  ;;  %v1980_v26 = vor.u32 %v2367_v23, %v1979_v21 }
 0x15e   :  { %v419_v52 = vmul.f32 0.5, %v415_v46  ;;  %v420_v53 = vmul.f32 0.5, %v416_v47  ;;  %v2913_v54 = vadd.f32 %v417_v48, %v2882_v30  ;;  %v2916_v55 = vadd.f32 %v418_v51, %v2884_v31  ;;  %v2027_v47 = vld [vmem:[#allocation10 + $0xa8] sm:$0xf]  ;;  %v2379_v48 = vld [vmem:[#allocation10 + $0xb4] sm:$0xf0] }
 0x15f   :  { %v2020_v46 = vor.u32 %v2378_v44, %v2019_v43  ;;  %v2377_v51 = vld [vmem:[#allocation10 + $0xac] sm:$0xf]  ;;  %925 = vmatpush.bf16.msra.mxu0 %v2048_v41  ;;  %v1981_v25 = vld [vmem:[#allocation10 + $0x58] sm:$0xf0]  ;;  %v2360_v29 = vld [vmem:[#allocation10 + $0x24] sm:$0xf] }
 0x160   :  { %v425_v56 = vadd.f32 %v2916_v55, %v2913_v54  ;;  %v534_v57 = vpack.c.bf16 %v2916_v55, %v2913_v54  ;;  %v2923_v58 = vadd.f32 %v419_v52, %v2896_v49  ;;  %v2926_v59 = vadd.f32 %v420_v53, %v2898_v50  ;;  %v2029_v53 = vld [vmem:[#allocation10 + $0xb8] sm:$0xf0]  ;;  %v1957_v32 = vld [vmem:[#allocation10 + $0x30] sm:$0xf0]  ;;  %v1955_v33 = vld [vmem:[#allocation10 + $0x20] sm:$0xf] }
 0x161   :  { %v2028_v52 = vor.u32 %v2379_v48, %v2027_v47  ;;  %888 = vmatpush.bf16.msrb.mxu2 %v2024_v45  ;;  %869 = vmatpush.bf16.msrb.mxu1 %v2020_v46  ;;  %v1984_v27 = vor.u32 %v2365_v24, %v1981_v25  ;;  %v1960_v34 = vor.u32 %v2360_v29, %v1957_v32  ;;  %v2362_v35 = vld [vmem:[#allocation10 + $0x2c] sm:$0xf0]  ;;  %v1963_v36 = vld [vmem:[#allocation10 + $0x28] sm:$0xf]  ;;  %v2363_v37 = vld [vmem:[#allocation10 + $0x34] sm:$0xf0] }
 0x162   :  { %v426_v61 = vrot.slane %v425_v56, 4  ;;  %609 = vmatmul.bf16.vlgmr.msrb.gmra.mxu0 %v534_v57  ;;  %v432_v30 = vadd.f32 %v2926_v59, %v2923_v58  ;;  %v535_v50 = vpack.c.bf16 %v2926_v59, %v2923_v58  ;;  %v2372_v57 = vld [vmem:[#allocation10 + $0x84] sm:$0xf]  ;;  %v1956_v38 = vor.u32 %v2362_v35, %v1955_v33  ;;  %v2361_v40 = vld [vmem:[#allocation10 + $0x2c] sm:$0xf] }
 0x163   :  { %907 = vmatpush.bf16.msrb.mxu3 %v2028_v52  ;;  %v1964_v39 = vor.u32 %v2363_v37, %v1963_v36  ;;  %v1965_v41 = vld [vmem:[#allocation10 + $0x38] sm:$0xf0]  ;;  %v2356_v43 = vld [vmem:[#allocation10 + $0x4] sm:$0xf]  ;;  %v1941_v44 = vld [vmem:[#allocation10 + $0x10] sm:$0xf0] }
 0x164   :  { %v433_v62 = vrot.slane %v432_v30, 4  ;;  %v427_v31 = vadd.f32 %v426_v61, %v425_v56  ;;  %v2032_v56 = vor.u32 %v2377_v51, %v2029_v53  ;;  %v2005_v61 = vld [vmem:[#allocation10 + $0x90] sm:$0xf0]  ;;  %v1968_v42 = vor.u32 %v2361_v40, %v1965_v41  ;;  %v1939_v45 = vld [vmem:[#allocation10] sm:$0xf]  ;;  %v2393_v16 = vld [vmem:[#allocation11 + $0x28] sm:$0xff] }
 0x165   :  { %v1944_v46 = vor.u32 %v2356_v43, %v1941_v44  ;;  %v2358_v47 = vld [vmem:[#allocation10 + $0xc] sm:$0xf0]  ;;  %v1947_v48 = vld [vmem:[#allocation10 + $0x8] sm:$0xf]  ;;  %v2359_v51 = vld [vmem:[#allocation10 + $0x14] sm:$0xf0] }
 0x166   :  { %v434_v63 = vadd.f32 %v433_v62, %v432_v30  ;;  %v428_v0 = vrot.slane %v427_v31, 2  ;;  %v2003_v30 = vld [vmem:[#allocation10 + $0x80] sm:$0xf]  ;;  %926 = vmatpush.bf16.msra.mxu0 %v2032_v56  ;;  %v2008_v62 = vor.u32 %v2372_v57, %v2005_v61  ;;  %v1940_v52 = vor.u32 %v2358_v47, %v1939_v45  ;;  %v2357_v56 = vld [vmem:[#allocation10 + $0xc] sm:$0xf] }
 0x167   :  { %v1948_v53 = vor.u32 %v2359_v51, %v1947_v48  ;;  %v1949_v57 = vld [vmem:[#allocation10 + $0x18] sm:$0xf0]  ;;  %v2417_v17 = vld [vmem:[#allocation11 + $0xe8] sm:$0xff]  ;;  %v2392_v51 = vld [vmem:[#allocation11 + $0x20] sm:$0xff] }
 0x168   :  { %v429_v1 = vadd.f32 %v428_v0, %v427_v31  ;;  %v435_v2 = vrot.slane %v434_v63, 2  ;;  %v2374_v31 = vld [vmem:[#allocation10 + $0x8c] sm:$0xf0]  ;;  %v2375_v0 = vld [vmem:[#allocation10 + $0x94] sm:$0xf0]  ;;  %889 = vmatpush.bf16.msrb.mxu2 %v2008_v62  ;;  %v1952_v61 = vor.u32 %v2357_v56, %v1949_v57  ;;  %v2409_v56 = vld [vmem:[#allocation11 + $0xa8] sm:$0xff] }
 0x169   :  { %v2391_v57 = vld [vmem:[#allocation11 + $0x18] sm:$0xff] }
 0x16a   :  { %v430_v3 = vrot.slane %v429_v1, 1  ;;  %v436_v4 = vadd.f32 %v435_v2, %v434_v63  ;;  %v2011_v63 = vld [vmem:[#allocation10 + $0x88] sm:$0xf] }
 0x16b   :  { %v2012_v2 = vor.u32 %v2375_v0, %v2011_v63  ;;  %v2395_v63 = vld [vmem:[#allocation11 + $0x38] sm:$0xff] }
 0x16c   :  { %v431_v5 = vadd.f32 %v430_v3, %v429_v1  ;;  %v437_v6 = vrot.slane %v436_v4, 1  ;;  %v2004_v1 = vor.u32 %v2374_v31, %v2003_v30  ;;  %v2373_v3 = vld [vmem:[#allocation10 + $0x8c] sm:$0xf]  ;;  %v2419_v0 = vld [vmem:[#allocation11 + $0xf8] sm:$0xff] }
 0x16d   :  { %908 = vmatpush.bf16.msrb.mxu3 %v2012_v2 }
 0x16e   :  { %v438_v49 = vadd.f32 %v437_v6, %v436_v4  ;;  %v439_v7 = vmul.f32 %v431_v5, %v2904_v60  ;;  %v2013_v4 = vld [vmem:[#allocation10 + $0x98] sm:$0xf0]  ;;  %v2368_v5 = vld [vmem:[#allocation10 + $0x64] sm:$0xf]  ;;  %870 = vmatpush.bf16.msrb.mxu1 %v2004_v1 }
 0x16f   :  { %v2016_v6 = vor.u32 %v2373_v3, %v2013_v4  ;;  %v2472_v3 = vld [vmem:[%s3121_s6 + $0x1] ss:$0 sm:$0xff] }
 0x170   :  { %v440_v8 = vmul.f32 %v438_v49, %v2904_v60  ;;  %v441_v9 = vpack.c.bf16 %v439_v7, %v439_v7  ;;  %v1989_v49 = vld [vmem:[#allocation10 + $0x70] sm:$0xf0]  ;;  %v2403_v4 = vld [vmem:[#allocation11 + $0x78] sm:$0xff] }
 0x171   :  { %v1992_v7 = vor.u32 %v2368_v5, %v1989_v49  ;;  %927 = vmatpush.bf16.msra.mxu0 %v2016_v6  ;;  %v2411_v5 = vld [vmem:[#allocation11 + $0xb8] sm:$0xff]  ;;  %v2394_v6 = vld [vmem:[#allocation11 + $0x30] sm:$0xff] }
 0x172   :  { %614 = vmatmul.bf16.gmra.mxu0 %v535_v50  ;;  %v442_v10 = vpack.c.bf16 %v440_v8, %v440_v8  ;;  %v462_v11 = vunpack.c.l.b16 %v441_v9  ;;  %v1987_v50 = vld [vmem:[#allocation10 + $0x60] sm:$0xf]  ;;  %v2370_v8 = vld [vmem:[#allocation10 + $0x6c] sm:$0xf0]  ;;  %v1995_v9 = vld [vmem:[#allocation10 + $0x68] sm:$0xf] }
 0x173   :  { %890 = vmatpush.bf16.msrb.mxu2 %v1992_v7  ;;  %v2418_v49 = vld [vmem:[#allocation11 + $0xf0] sm:$0xff] }
 0x174   :  { %v463_v12 = vunpack.c.l.b16 %v442_v10  ;;  %v1988_v10 = vor.u32 %v2370_v8, %v1987_v50 }
 0x176   :  { %v464_v13 = vsel %vm249_vm3, %v463_v12, %v462_v11  ;;  %v2371_v11 = vld [vmem:[#allocation10 + $0x74] sm:$0xf0]  ;;  %v2369_v12 = vld [vmem:[#allocation10 + $0x6c] sm:$0xf]  ;;  %871 = vmatpush.bf16.msrb.mxu1 %v1988_v10  ;;  %v2410_v10 = vld [vmem:[#allocation11 + $0xb0] sm:$0xff] }
 0x177   :  { %v465_v14 = vpack.c.b16 %v464_v13, %v464_v13  ;;  %v1997_v13 = vld [vmem:[#allocation10 + $0x78] sm:$0xf0]  ;;  %891 = vmatpush.bf16.msrb.mxu2 %v1976_v19 }
 0x178   :  { %v2000_v15 = vor.u32 %v2369_v12, %v1997_v13 }
 0x179   :  { %523 = vmatmul.bf16.vlgmr.msra.gmra.mxu3 %v465_v14  ;;  %v1996_v14 = vor.u32 %v2371_v11, %v1995_v9  ;;  %v2402_v9 = vld [vmem:[#allocation11 + $0x70] sm:$0xff] }
 0x17a   :  { %928 = vmatpush.bf16.msra.mxu0 %v2000_v15  ;;  %872 = vmatpush.bf16.msrb.mxu1 %v1972_v22 }
 0x17b   :  { %909 = vmatpush.bf16.msrb.mxu3 %v1996_v14  ;;  %892 = vmatpush.bf16.msrb.mxu2 %v1960_v34 }
 0x17e   :  { %929 = vmatpush.bf16.msra.mxu0 %v1984_v27  ;;  %873 = vmatpush.bf16.msrb.mxu1 %v1956_v38 }
 0x17f   :  { %910 = vmatpush.bf16.msrb.mxu3 %v1980_v26  ;;  %893 = vmatpush.bf16.msrb.mxu2 %v1944_v46 }
 0x182   :  { %930 = vmatpush.bf16.msra.mxu0 %v1968_v42  ;;  %874 = vmatpush.bf16.msrb.mxu1 %v1940_v52  ;;  %v2416_v52 = vld [vmem:[#allocation11 + $0xe0] sm:$0xff] }
 0x183   :  { %911 = vmatpush.bf16.msrb.mxu3 %v1964_v39  ;;  %1140 = vmatpush.bf16.msra.mxu2 %v2403_v4  ;;  %v2406_v4 = vld [vmem:[#allocation11 + $0x90] sm:$0xff] }
 0x186   :  { %931 = vmatpush.bf16.msra.mxu0 %v1952_v61  ;;  %1025 = vmatpush.bf16.msra.mxu1 %v2395_v63  ;;  %v2415_v61 = vld [vmem:[#allocation11 + $0xd8] sm:$0xff] }
 0x187   :  { %912 = vmatpush.bf16.msrb.mxu3 %v1948_v53  ;;  %1141 = vmatpush.bf16.msra.mxu2 %v2402_v9  ;;  %v2401_v53 = vld [vmem:[#allocation11 + $0x68] sm:$0xff]  ;;  %v2399_v63 = vld [vmem:[#allocation11 + $0x58] sm:$0xff] }
 0x188   :  { %v697_v9 = vld [vmem:[%s3123_s8] sm:$0xf] }
 0x18a   :  { %1370 = vmatpush.bf16.msrb.mxu0 %v2419_v0  ;;  %1026 = vmatpush.bf16.msra.mxu1 %v2394_v6  ;;  %v2407_v0 = vld [vmem:[#allocation11 + $0x98] sm:$0xff]  ;;  %v2412_v6 = vld [vmem:[#allocation11 + $0xc0] sm:$0xff] }
 0x18b   :  { %1255 = vmatpush.bf16.msra.mxu3 %v2411_v5  ;;  %1142 = vmatpush.bf16.msra.mxu2 %v2401_v53  ;;  %v2388_v5 = vld [vmem:[#allocation11] sm:$0xff] }
 0x18e   :  { %1371 = vmatpush.bf16.msrb.mxu0 %v2418_v49  ;;  %1027 = vmatpush.bf16.msra.mxu1 %v2393_v16  ;;  %v2397_v49 = vld [vmem:[#allocation11 + $0x48] sm:$0xff]  ;;  %v2973_v16 = vperm.slane %v697_v9, 1 }
 0x18f   :  { %1256 = vmatpush.bf16.msra.mxu3 %v2410_v10  ;;  %v2967_v10 = vperm.slane %v697_v9, 0 }
 0x192   :  { %1372 = vmatpush.bf16.msrb.mxu0 %v2417_v17  ;;  %1028 = vmatpush.bf16.msra.mxu1 %v2392_v51 }
 0x193   :  { %1257 = vmatpush.bf16.msra.mxu3 %v2409_v56  ;;  %v2425_v56 = vld [vmem:[#allocation13 + $0x28] sm:$0xff] }
 0x196   :  { %1373 = vmatpush.bf16.msrb.mxu0 %v2416_v52  ;;  %1029 = vmatpush.bf16.msra.mxu1 %v2391_v57 }
 0x19a   :  { %1374 = vmatpush.bf16.msrb.mxu0 %v2415_v61 }
 0x1df   :  { %v610_v28 = vpop.f32.mrf.mxu0 }
 0x1e7   :  { %v612_v30 = vpop.f32.mrf.mxu0 }
 0x1ef   :  { %v615_v62 = vpop.f32.mrf.mxu0 }
 0x1f7   :  { %v617_v11 = vpop.f32.mrf.mxu0 }
 0x1fc   :  { %v524_v31 = vpop.f32.mrf.mxu3 }
 0x1fd   :  { %v529_v1 = vrot.slane %v524_v31, 1  ;;  %v530_v2 = vperm.slane %v524_v31, 0  ;;  %v2414_v31 = vld [vmem:[#allocation11 + $0xd0] sm:$0xff] }
 0x1fe   :  { %1375 = vmatpush.bf16.msrb.mxu0 %v2414_v31 }
 0x1ff   :  { %v531_v7 = vperm.slane %v529_v1, 0  ;;  %v611_v50 = vadd.f32 %v610_v28, %v530_v2  ;;  %v613_v8 = vadd.f32 %v612_v30, %v530_v2  ;;  %v2400_v30 = vld [vmem:[#allocation11 + $0x60] sm:$0xff]  ;;  %v2389_v1 = vld [vmem:[#allocation11 + $0x8] sm:$0xff] }
 0x200   :  { %1143 = vmatpush.bf16.msra.mxu2 %v2400_v30  ;;  %v2413_v2 = vld [vmem:[#allocation11 + $0xc8] sm:$0xff] }
 0x201   :  { %v616_v12 = vadd.f32 %v615_v62, %v531_v7  ;;  %v618_v13 = vadd.f32 %v617_v11, %v531_v7  ;;  %v625_v14 = vadd.f32 %v2472_v3, %v611_v50  ;;  %v626_v15 = vadd.f32 %v2472_v3, %v613_v8  ;;  %v2390_v62 = vld [vmem:[#allocation11 + $0x10] sm:$0xff]  ;;  %v2405_v7 = vld [vmem:[#allocation11 + $0x88] sm:$0xff]  ;;  %v2396_v50 = vld [vmem:[#allocation11 + $0x40] sm:$0xff] }
 0x202   :  { %1030 = vmatpush.bf16.msra.mxu1 %v2390_v62  ;;  %1376 = vmatpush.bf16.msrb.mxu0 %v2413_v2  ;;  %v2404_v8 = vld [vmem:[#allocation11 + $0x80] sm:$0xff]  ;;  %v2449_v62 = vld [vmem:[#allocation13 + $0xe8] sm:$0xff] }
 0x203   :  { %v627_v18 = vadd.f32 %v2472_v3, %v616_v12  ;;  %v628_v19 = vadd.f32 %v2472_v3, %v618_v13  ;;  %v629_v20 = vmax.f32 %v625_v14, 0.0  ;;  %v630_v21 = vmax.f32 %v626_v15, 0.0  ;;  %v2398_v3 = vld [vmem:[#allocation11 + $0x50] sm:$0xff] }
 0x204   :  { %v526_v22 = vpop.f32.mrf.mxu3  ;;  %1144 = vmatpush.bf16.msra.mxu2 %v2399_v63  ;;  %v2969_v12 = vperm.slane %v697_v9, 3 }
 0x205   :  { %v631_v23 = vmax.f32 %v627_v18, 0.0  ;;  %v632_v24 = vmax.f32 %v628_v19, 0.0  ;;  %v633_v25 = vmul.f32 0.5, %v629_v20  ;;  %v634_v26 = vmul.f32 0.5, %v630_v21 }
 0x206   :  { %1031 = vmatpush.bf16.msra.mxu1 %v2389_v1  ;;  %1377 = vmatpush.bf16.msrb.mxu0 %v2412_v6  ;;  %v2975_v18 = vperm.slane %v697_v9, 2 }
 0x207   :  { %v635_v27 = vmul.f32 0.5, %v631_v23  ;;  %v636_v28 = vmul.f32 0.5, %v632_v24  ;;  %v2939_v29 = vadd.f32 %v633_v25, %v2913_v54  ;;  %v2942_v32 = vadd.f32 %v634_v26, %v2916_v55 }
 0x208   :  { %1145 = vmatpush.bf16.msra.mxu2 %v2398_v3 }
 0x209   :  { %v2945_v33 = vadd.f32 %v635_v27, %v2923_v58  ;;  %v2948_v34 = vadd.f32 %v636_v28, %v2926_v59  ;;  %641 = vst [vmem:[#allocation14] sm:$0xff] %v2939_v29  ;;  %v663_v35 = vpack.c.bf16 %v2942_v32, %v2939_v29  ;;  %v645_v36 = vadd.f32 %v2942_v32, %v2939_v29  ;;  %v2427_v28 = vld [vmem:[#allocation13 + $0x38] sm:$0xff] }
 0x20a   :  { %642 = vst [vmem:[#allocation14 + $0x8] sm:$0xff] %v2942_v32  ;;  %1032 = vmatpush.bf16.msra.mxu1 %v2388_v5 }
 0x20b   :  { %643 = vst [vmem:[#allocation14 + $0x10] sm:$0xff] %v2945_v33  ;;  %875 = vmatmul.bf16.vlgmr.msrb.gmra.mxu1 %v663_v35  ;;  %894 = vmatmul.bf16.vlgmr.msrb.gmra.mxu2 %v663_v35  ;;  %v646_v54 = vrot.slane %v645_v36, 4  ;;  %v652_v55 = vadd.f32 %v2948_v34, %v2945_v33  ;;  %v664_v47 = vpack.c.bf16 %v2948_v34, %v2945_v33 }
 0x20c   :  { %644 = vst [vmem:[#allocation14 + $0x18] sm:$0xff] %v2948_v34  ;;  %913 = vmatmul.bf16.vlgmr.msrb.gmra.mxu3 %v663_v35  ;;  %932 = vmatmul.bf16.vlgmr.msra.gmra.mxu0 %v663_v35  ;;  %v2451_v35 = vld [vmem:[#allocation13 + $0xf8] sm:$0xff] }
 0x20d   :  { %v647_v58 = vadd.f32 %v646_v54, %v645_v36  ;;  %v653_v59 = vrot.slane %v652_v55, 4  ;;  %1146 = vmatpush.bf16.msra.mxu2 %v2397_v49  ;;  %1726 = vmatpush.bf16.msra.mxu0 %v2451_v35  ;;  %1761 = dma.vmem_to_hbm [thread:$0]  %s1754_s2, 512, %s1756_s29, [#allocation4], %s2747_s30, %s2747_s30, %s2748_s1  }
 0x20e   :  { %1669 = vmatpush.bf16.msrb.mxu1 %v2427_v28 }
 0x20f   :  { %v648_v37 = vrot.slane %v647_v58, 2  ;;  %v654_v38 = vadd.f32 %v653_v59, %v652_v55  ;;  %v2426_v59 = vld [vmem:[#allocation13 + $0x30] sm:$0xff] }
 0x211   :  { %v649_v39 = vadd.f32 %v648_v37, %v647_v58  ;;  %v655_v40 = vrot.slane %v654_v38, 2  ;;  %1147 = vmatpush.bf16.msra.mxu2 %v2396_v50  ;;  %v2450_v37 = vld [vmem:[#allocation13 + $0xf0] sm:$0xff] }
 0x212   :  { %1670 = vmatpush.bf16.msrb.mxu1 %v2426_v59  ;;  %1727 = vmatpush.bf16.msra.mxu0 %v2450_v37 }
 0x213   :  { %v650_v41 = vrot.slane %v649_v39, 1  ;;  %v656_v42 = vadd.f32 %v655_v40, %v654_v38  ;;  %v2435_v38 = vld [vmem:[#allocation13 + $0x78] sm:$0xff] }
 0x215   :  { %v651_v43 = vadd.f32 %v650_v41, %v649_v39  ;;  %v657_v44 = vrot.slane %v656_v42, 1  ;;  %1688 = vmatpush.bf16.msrb.mxu2 %v2435_v38 }
 0x216   :  { %1671 = vmatpush.bf16.msrb.mxu1 %v2425_v56  ;;  %1728 = vmatpush.bf16.msra.mxu0 %v2449_v62  ;;  %v2442_v62 = vld [vmem:[#allocation13 + $0xb0] sm:$0xff] }
 0x217   :  { %v658_v45 = vadd.f32 %v657_v44, %v656_v42  ;;  %v659_v46 = vmul.f32 %v651_v43, %v2904_v60 }
 0x219   :  { %v660_v48 = vmul.f32 %v658_v45, %v2904_v60  ;;  %661 = vst [vmem:[#allocation15] sm:$0x1] %v659_v46  ;;  %v2408_v60 = vld [vmem:[#allocation11 + $0xa0] sm:$0xff] }
 0x21a   :  { %1258 = vmatpush.bf16.msra.mxu3 %v2408_v60 }
 0x21b   :  { %880 = vmatmul.bf16.gmra.mxu1 %v664_v47  ;;  %899 = vmatmul.bf16.gmra.mxu2 %v664_v47  ;;  %662 = vst [vmem:[#allocation15 + $0x1] sm:$0x1] %v660_v48 }
 0x21c   :  { %918 = vmatmul.bf16.gmra.mxu3 %v664_v47  ;;  %937 = vmatmul.bf16.gmra.mxu0 %v664_v47 }
 0x21e   :  { %1259 = vmatpush.bf16.msra.mxu3 %v2407_v0 }
 0x222   :  { %1260 = vmatpush.bf16.msra.mxu3 %v2406_v4 }
 0x226   :  { %1261 = vmatpush.bf16.msra.mxu3 %v2405_v7 }
 0x22a   :  { %1262 = vmatpush.bf16.msra.mxu3 %v2404_v8 }
 0x288   :  { %v876_v11 = vpop.f32.mrf.mxu1 }
 0x289   :  { %v933_v13 = vpop.f32.mrf.mxu0  ;;  %v877_v14 = vadd.f32 %v876_v11, %v2967_v10 }
 0x28a   :  { %v934_v15 = vadd.f32 %v933_v13, %v2969_v12 }
 0x28b   :  { %v943_v19 = vmax.f32 %v877_v14, 0.0 }
 0x28c   :  { %v1286_v21 = vmax.f32 %v934_v15, 0.0 }
 0x28d   :  { %v947_v36 = vmul.f32 0.5, %v943_v19 }
 0x28e   :  { %v895_v17 = vpop.f32.mrf.mxu2  ;;  %v1290_v55 = vmul.f32 0.5, %v1286_v21 }
 0x28f   :  { %v914_v20 = vpop.f32.mrf.mxu3  ;;  %v896_v23 = vadd.f32 %v895_v17, %v2973_v16  ;;  %v2982_v44 = vadd.f32 %v947_v36, %v2939_v29 }
 0x290   :  { %v878_v22 = vpop.f32.mrf.mxu1  ;;  %v915_v26 = vadd.f32 %v914_v20, %v2975_v18  ;;  %v2989_v48 = vadd.f32 %v1290_v55, %v2939_v29 }
 0x291   :  { %v879_v24 = vadd.f32 %v878_v22, %v2967_v10  ;;  %v935_v25 = vpop.f32.mrf.mxu0  ;;  %v1056_v39 = vmax.f32 %v896_v23, 0.0 }
 0x292   :  { %v936_v27 = vadd.f32 %v935_v25, %v2969_v12  ;;  %v1171_v41 = vmax.f32 %v915_v26, 0.0 }
 0x293   :  { %v944_v54 = vmax.f32 %v879_v24, 0.0  ;;  %v1060_v57 = vmul.f32 0.5, %v1056_v39 }
 0x294   :  { %v1287_v58 = vmax.f32 %v936_v27, 0.0  ;;  %v1175_v31 = vmul.f32 0.5, %v1171_v41 }
 0x295   :  { %v948_v40 = vmul.f32 0.5, %v944_v54  ;;  %v3002_v5 = vadd.f32 %v1060_v57, %v2939_v29  ;;  %v2424_v57 = vld [vmem:[#allocation13 + $0x20] sm:$0xff] }
 0x296   :  { %v1291_v42 = vmul.f32 0.5, %v1287_v58  ;;  %v897_v43 = vpop.f32.mrf.mxu2  ;;  %v3008_v49 = vadd.f32 %v1175_v31, %v2939_v29  ;;  %1672 = vmatpush.bf16.msrb.mxu1 %v2424_v57  ;;  %v2447_v31 = vld [vmem:[#allocation13 + $0xd8] sm:$0xff] }
 0x297   :  { %v2985_v45 = vadd.f32 %v948_v40, %v2942_v32  ;;  %v898_v46 = vadd.f32 %v897_v43, %v2973_v16  ;;  %v916_v47 = vpop.f32.mrf.mxu3 }
 0x298   :  { %v2992_v51 = vadd.f32 %v1291_v42, %v2942_v32  ;;  %v917_v52 = vadd.f32 %v916_v47, %v2975_v18  ;;  %v881_v53 = vpop.f32.mrf.mxu1 }
 0x299   :  { %v955_v61 = vpack.c.bf16 %v2985_v45, %v2982_v44  ;;  %v1057_v30 = vmax.f32 %v898_v46, 0.0  ;;  %v938_v60 = vpop.f32.mrf.mxu0  ;;  %v882_v2 = vadd.f32 %v881_v53, %v2967_v10 }
 0x29a   :  { %v1298_v63 = vpack.c.bf16 %v2992_v51, %v2989_v48  ;;  %v1172_v0 = vmax.f32 %v917_v52, 0.0  ;;  %v939_v4 = vadd.f32 %v938_v60, %v2969_v12  ;;  %v2434_v60 = vld [vmem:[#allocation13 + $0x70] sm:$0xff] }
 0x29b   :  { %v1061_v1 = vmul.f32 0.5, %v1057_v30  ;;  %1033 = vmatmul.bf16.vlgmr.msra.gmra.mxu1 %v955_v61  ;;  %v945_v9 = vmax.f32 %v882_v2, 0.0  ;;  %v2443_v61 = vld [vmem:[#allocation13 + $0xb8] sm:$0xff]  ;;  %v2448_v30 = vld [vmem:[#allocation13 + $0xe0] sm:$0xff]  ;;  %1689 = vmatpush.bf16.msrb.mxu2 %v2434_v60 }
 0x29c   :  { %v1176_v3 = vmul.f32 0.5, %v1172_v0  ;;  %1378 = vmatmul.bf16.vlgmr.msrb.gmra.mxu0 %v1298_v63  ;;  %v1288_v14 = vmax.f32 %v939_v4, 0.0  ;;  %1707 = vmatpush.bf16.msrb.mxu3 %v2443_v61  ;;  %v2422_v63 = vld [vmem:[#allocation13 + $0x10] sm:$0xff]  ;;  %v2441_v0 = vld [vmem:[#allocation13 + $0xa8] sm:$0xff]  ;;  %v2432_v2 = vld [vmem:[#allocation13 + $0x60] sm:$0xff] }
 0x29d   :  { %v3005_v6 = vadd.f32 %v1061_v1, %v2942_v32  ;;  %v949_v21 = vmul.f32 0.5, %v945_v9  ;;  %1729 = vmatpush.bf16.msra.mxu0 %v2448_v30  ;;  %v2446_v1 = vld [vmem:[#allocation13 + $0xd0] sm:$0xff]  ;;  %v2440_v4 = vld [vmem:[#allocation13 + $0xa0] sm:$0xff] }
 0x29e   :  { %v3011_v7 = vadd.f32 %v1176_v3, %v2942_v32  ;;  %v900_v50 = vpop.f32.mrf.mxu2  ;;  %v1292_v23 = vmul.f32 0.5, %v1288_v14  ;;  %v2421_v3 = vld [vmem:[#allocation13 + $0x8] sm:$0xff]  ;;  %v2420_v9 = vld [vmem:[#allocation13] sm:$0xff]  ;;  %v2430_v14 = vld [vmem:[#allocation13 + $0x50] sm:$0xff] }
 0x29f   :  { %v1068_v8 = vpack.c.bf16 %v3005_v6, %v3002_v5  ;;  %v919_v11 = vpop.f32.mrf.mxu3  ;;  %v901_v17 = vadd.f32 %v900_v50, %v2973_v16  ;;  %v2445_v50 = vld [vmem:[#allocation13 + $0xc8] sm:$0xff] }
 0x2a0   :  { %v1183_v13 = vpack.c.bf16 %v3011_v7, %v3008_v49  ;;  %v883_v15 = vpop.f32.mrf.mxu1  ;;  %v920_v32 = vadd.f32 %v919_v11, %v2975_v18  ;;  %v3030_v58 = vadd.f32 %v1292_v23, %v2945_v33  ;;  %1708 = vmatpush.bf16.msrb.mxu3 %v2442_v62  ;;  %v2439_v11 = vld [vmem:[#allocation13 + $0x98] sm:$0xff] }
 0x2a1   :  { %v884_v19 = vadd.f32 %v883_v15, %v2967_v10  ;;  %v940_v29 = vpop.f32.mrf.mxu0  ;;  %1148 = vmatmul.bf16.vlgmr.msra.gmra.mxu2 %v1068_v8  ;;  %v1058_v25 = vmax.f32 %v901_v17, 0.0  ;;  %v3023_v10 = vadd.f32 %v949_v21, %v2945_v33  ;;  %1730 = vmatpush.bf16.msra.mxu0 %v2447_v31  ;;  %v2431_v8 = vld [vmem:[#allocation13 + $0x58] sm:$0xff]  ;;  %v2438_v15 = vld [vmem:[#allocation13 + $0x90] sm:$0xff]  ;;  %v2429_v17 = vld [vmem:[#allocation13 + $0x48] sm:$0xff] }
 0x2a2   :  { %v941_v20 = vadd.f32 %v940_v29, %v2969_v12  ;;  %1263 = vmatmul.bf16.vlgmr.msra.gmra.mxu3 %v1183_v13  ;;  %v1173_v27 = vmax.f32 %v920_v32, 0.0  ;;  %v2444_v13 = vld [vmem:[#allocation13 + $0xc0] sm:$0xff] }
 0x2a3   :  { %v946_v22 = vmax.f32 %v884_v19, 0.0  ;;  %v1062_v37 = vmul.f32 0.5, %v1058_v25  ;;  %v2437_v19 = vld [vmem:[#allocation13 + $0x88] sm:$0xff]  ;;  %v2428_v29 = vld [vmem:[#allocation13 + $0x40] sm:$0xff] }
 0x2a4   :  { %v1289_v24 = vmax.f32 %v941_v20, 0.0  ;;  %v1177_v39 = vmul.f32 0.5, %v1173_v27  ;;  %1709 = vmatpush.bf16.msrb.mxu3 %v2441_v0  ;;  %v2436_v32 = vld [vmem:[#allocation13 + $0x80] sm:$0xff]  ;;  %v2473_v20 = vld [vmem:[%s3125_s10] ss:$0 sm:$0xff] }
 0x2a5   :  { %v950_v26 = vmul.f32 0.5, %v946_v22  ;;  %1731 = vmatpush.bf16.msra.mxu0 %v2446_v1  ;;  %v2474_v22 = vld [vmem:[%s3125_s10 + $0x3] ss:$0 sm:$0xff] }
 0x2a6   :  { %v1293_v28 = vmul.f32 0.5, %v1289_v24  ;;  %v902_v35 = vpop.f32.mrf.mxu2  ;;  %v3046_v47 = vadd.f32 %v1177_v39, %v2945_v33 }
 0x2a7   :  { %v903_v36 = vadd.f32 %v902_v35, %v2973_v16  ;;  %v921_v54 = vpop.f32.mrf.mxu3  ;;  %v3026_v55 = vadd.f32 %v950_v26, %v2948_v34 }
 0x2a8   :  { %v922_v12 = vadd.f32 %v921_v54, %v2975_v18  ;;  %v3033_v59 = vadd.f32 %v1293_v28, %v2948_v34  ;;  %v3040_v18 = vadd.f32 %v1062_v37, %v2945_v33  ;;  %v2423_v33 = vld [vmem:[#allocation13 + $0x18] sm:$0xff]  ;;  %1710 = vmatpush.bf16.msrb.mxu3 %v2440_v4 }
 0x2a9   :  { %v1059_v38 = vmax.f32 %v903_v36, 0.0  ;;  %v956_v16 = vpack.c.bf16 %v3026_v55, %v3023_v10  ;;  %1673 = vmatpush.bf16.msrb.mxu1 %v2423_v33  ;;  %1732 = vmatpush.bf16.msra.mxu0 %v2445_v50 }
 0x2aa   :  { %v1174_v40 = vmax.f32 %v922_v12, 0.0  ;;  %v1299_v41 = vpack.c.bf16 %v3033_v59, %v3030_v58 }
 0x2ab   :  { %v1063_v42 = vmul.f32 0.5, %v1059_v38  ;;  %1038 = vmatmul.bf16.gmra.mxu1 %v956_v16  ;;  %v3064_v38 = vld [vmem:[%s3125_s10 + $0x1] ss:$0 sm:$0xff] }
 0x2ac   :  { %v1178_v43 = vmul.f32 0.5, %v1174_v40  ;;  %1383 = vmatmul.bf16.gmra.mxu0 %v1299_v41  ;;  %1711 = vmatpush.bf16.msrb.mxu3 %v2439_v11  ;;  %v3069_v41 = vld [vmem:[%s3125_s10 + $0x2] ss:$0 sm:$0xff]  ;;  %s2744_s10 = smov [#allocation15]  }
 0x2ad   :  { %v3043_v46 = vadd.f32 %v1063_v42, %v2948_v34  ;;  %1674 = vmatpush.bf16.msrb.mxu1 %v2422_v63  ;;  %1733 = vmatpush.bf16.msra.mxu0 %v2444_v13  ;;  %s1766_s16 = sshll.u32 %s2744_s10, 4  ;;  %s1767_s16 = int_to_ptr.vmem [resolvable:$true] %s1766_s16 }
 0x2ae   :  { %v3049_v52 = vadd.f32 %v1178_v43, %v2948_v34  ;;  %v2433_v34 = vld [vmem:[#allocation13 + $0x68] sm:$0xff]  ;;  %1774 = dma.vmem_to_hbm [thread:$0]  %s1767_s16, 32, %s1769_s0, [#allocation16], %s2741_s4, %s2741_s4, %s2745_s25  }
 0x2af   :  { %v1069_v53 = vpack.c.bf16 %v3043_v46, %v3040_v18  ;;  %1690 = vmatpush.bf16.msrb.mxu2 %v2433_v34 }
 0x2b0   :  { %v1184_v56 = vpack.c.bf16 %v3049_v52, %v3046_v47  ;;  %1712 = vmatpush.bf16.msrb.mxu3 %v2438_v15 }
 0x2b1   :  { %1153 = vmatmul.bf16.gmra.mxu2 %v1069_v53  ;;  %1675 = vmatpush.bf16.msrb.mxu1 %v2421_v3 }
 0x2b2   :  { %1268 = vmatmul.bf16.gmra.mxu3 %v1184_v56 }
 0x2b3   :  { %1691 = vmatpush.bf16.msrb.mxu2 %v2432_v2 }
 0x2b4   :  { %1713 = vmatpush.bf16.msrb.mxu3 %v2437_v19 }
 0x2b5   :  { %1676 = vmatpush.bf16.msrb.mxu1 %v2420_v9 }
 0x2b7   :  { %1692 = vmatpush.bf16.msrb.mxu2 %v2431_v8 }
 0x2b8   :  { %1714 = vmatpush.bf16.msrb.mxu3 %v2436_v32 }
 0x2bb   :  { %1693 = vmatpush.bf16.msrb.mxu2 %v2430_v14 }
 0x2bf   :  { %1694 = vmatpush.bf16.msrb.mxu2 %v2429_v17 }
 0x2c3   :  { %1695 = vmatpush.bf16.msrb.mxu2 %v2428_v29 }
 0x318   :  { %v1034_v21 = vpop.f32.mrf.mxu1 }
 0x319   :  { %v1379_v23 = vpop.f32.mrf.mxu0  ;;  %v1035_v24 = vadd.f32 %v2473_v20, %v1034_v21 }
 0x31a   :  { %v1380_v25 = vadd.f32 %v2474_v22, %v1379_v23 }
 0x31b   :  { %v1044_v26 = vmax.f32 %v1035_v24, 0.0 }
 0x31c   :  { %v1389_v27 = vmax.f32 %v1380_v25, 0.0 }
 0x31d   :  { %v1048_v12 = vmul.f32 0.5, %v1044_v26 }
 0x31e   :  { %v1393_v16 = vmul.f32 0.5, %v1389_v27 }
 0x31f   :  { %v1052_v56 = vadd.f32 %v1048_v12, %v2982_v44 }
 0x320   :  { %v1036_v28 = vpop.f32.mrf.mxu1  ;;  %v1397_v30 = vadd.f32 %v1393_v16, %v2989_v48 }
 0x321   :  { %v1037_v35 = vadd.f32 %v2473_v20, %v1036_v28  ;;  %v1381_v36 = vpop.f32.mrf.mxu0 }
 0x322   :  { %v1382_v54 = vadd.f32 %v2474_v22, %v1381_v36 }
 0x323   :  { %v1045_v37 = vmax.f32 %v1037_v35, 0.0 }
 0x324   :  { %v1390_v39 = vmax.f32 %v1382_v54, 0.0  ;;  %v1149_v40 = vpop.f32.mrf.mxu2 }
 0x325   :  { %v1049_v42 = vmul.f32 0.5, %v1045_v37  ;;  %v1264_v43 = vpop.f32.mrf.mxu3  ;;  %v1150_v61 = vadd.f32 %v3064_v38, %v1149_v40 }
 0x326   :  { %v1394_v53 = vmul.f32 0.5, %v1390_v39  ;;  %v1265_v33 = vadd.f32 %v3069_v41, %v1264_v43 }
 0x327   :  { %v1053_v57 = vadd.f32 %v1049_v42, %v2985_v45  ;;  %v1159_v0 = vmax.f32 %v1150_v61, 0.0 }
 0x328   :  { %v1398_v60 = vadd.f32 %v1394_v53, %v2992_v51  ;;  %v1039_v62 = vpop.f32.mrf.mxu1  ;;  %v1274_v2 = vmax.f32 %v1265_v33, 0.0 }
 0x329   :  { %v1401_v31 = vpack.c.bf16 %v1053_v57, %v1052_v56  ;;  %v1384_v34 = vpop.f32.mrf.mxu0  ;;  %v1040_v1 = vadd.f32 %v2473_v20, %v1039_v62  ;;  %v1163_v50 = vmul.f32 0.5, %v1159_v0 }
 0x32a   :  { %v1404_v63 = vpack.c.bf16 %v1398_v60, %v1397_v30  ;;  %v1385_v3 = vadd.f32 %v2474_v22, %v1384_v34  ;;  %v1278_v9 = vmul.f32 0.5, %v1274_v2 }
 0x32b   :  { %1677 = vmatmul.bf16.vlgmr.msrb.gmra.mxu1 %v1401_v31  ;;  %v1046_v51 = vmax.f32 %v1040_v1, 0.0  ;;  %v1167_v21 = vadd.f32 %v1163_v50, %v3002_v5 }
 0x32c   :  { %1734 = vmatmul.bf16.vlgmr.msra.gmra.mxu0 %v1404_v63  ;;  %v1151_v44 = vpop.f32.mrf.mxu2  ;;  %v1391_v11 = vmax.f32 %v1385_v3, 0.0  ;;  %v1282_v26 = vadd.f32 %v1278_v9, %v3008_v49 }
 0x32d   :  { %v1152_v45 = vadd.f32 %v3064_v38, %v1151_v44  ;;  %v1266_v4 = vpop.f32.mrf.mxu3  ;;  %v1050_v23 = vmul.f32 0.5, %v1046_v51 }
 0x32e   :  { %v1267_v48 = vadd.f32 %v3069_v41, %v1266_v4  ;;  %v1395_v27 = vmul.f32 0.5, %v1391_v11 }
 0x32f   :  { %v1160_v8 = vmax.f32 %v1152_v45, 0.0  ;;  %v1054_v5 = vadd.f32 %v1050_v23, %v3023_v10 }
 0x330   :  { %v1275_v13 = vmax.f32 %v1267_v48, 0.0  ;;  %v1041_v14 = vpop.f32.mrf.mxu1  ;;  %v1399_v49 = vadd.f32 %v1395_v27, %v3030_v58 }
 0x331   :  { %v1164_v15 = vmul.f32 0.5, %v1160_v8  ;;  %v1042_v17 = vadd.f32 %v2473_v20, %v1041_v14  ;;  %v1386_v19 = vpop.f32.mrf.mxu0 }
 0x332   :  { %v1279_v29 = vmul.f32 0.5, %v1275_v13  ;;  %v1387_v32 = vadd.f32 %v2474_v22, %v1386_v19 }
 0x333   :  { %v1168_v24 = vadd.f32 %v1164_v15, %v3005_v6  ;;  %v1047_v25 = vmax.f32 %v1042_v17, 0.0 }
 0x334   :  { %v1283_v28 = vadd.f32 %v1279_v29, %v3011_v7  ;;  %v1392_v35 = vmax.f32 %v1387_v32, 0.0  ;;  %v1154_v36 = vpop.f32.mrf.mxu2 }
 0x335   :  { %v1402_v54 = vpack.c.bf16 %v1168_v24, %v1167_v21  ;;  %v1051_v12 = vmul.f32 0.5, %v1047_v25  ;;  %v1269_v37 = vpop.f32.mrf.mxu3  ;;  %v1155_v22 = vadd.f32 %v3064_v38, %v1154_v36 }
 0x336   :  { %v1403_v20 = vpack.c.bf16 %v1283_v28, %v1282_v26  ;;  %v1396_v16 = vmul.f32 0.5, %v1392_v35  ;;  %v1270_v39 = vadd.f32 %v3069_v41, %v1269_v37 }
 0x337   :  { %1696 = vmatmul.bf16.vlgmr.msrb.gmra.mxu2 %v1402_v54  ;;  %v1055_v6 = vadd.f32 %v1051_v12, %v3026_v55  ;;  %v1161_v43 = vmax.f32 %v1155_v22, 0.0 }
 0x338   :  { %1715 = vmatmul.bf16.vlgmr.msrb.gmra.mxu3 %v1403_v20  ;;  %v1400_v7 = vadd.f32 %v1396_v16, %v3033_v59  ;;  %v1276_v53 = vmax.f32 %v1270_v39, 0.0 }
 0x339   :  { %v1405_v40 = vpack.c.bf16 %v1055_v6, %v1054_v5  ;;  %v1165_v55 = vmul.f32 0.5, %v1161_v43 }
 0x33a   :  { %v1408_v42 = vpack.c.bf16 %v1400_v7, %v1399_v49  ;;  %v1280_v60 = vmul.f32 0.5, %v1276_v53 }
 0x33b   :  { %1682 = vmatmul.bf16.gmra.mxu1 %v1405_v40  ;;  %v1169_v59 = vadd.f32 %v1165_v55, %v3040_v18 }
 0x33c   :  { %1739 = vmatmul.bf16.gmra.mxu0 %v1408_v42  ;;  %v1156_v56 = vpop.f32.mrf.mxu2  ;;  %v1284_v34 = vadd.f32 %v1280_v60, %v3046_v47 }
 0x33d   :  { %v1157_v57 = vadd.f32 %v3064_v38, %v1156_v56  ;;  %v1271_v61 = vpop.f32.mrf.mxu3 }
 0x33e   :  { %v1272_v10 = vadd.f32 %v3069_v41, %v1271_v61 }
 0x33f   :  { %v1162_v30 = vmax.f32 %v1157_v57, 0.0 }
 0x340   :  { %v1277_v33 = vmax.f32 %v1272_v10, 0.0 }
 0x341   :  { %v1166_v62 = vmul.f32 0.5, %v1162_v30 }
 0x342   :  { %v1281_v58 = vmul.f32 0.5, %v1277_v33 }
 0x343   :  { %v1170_v31 = vadd.f32 %v1166_v62, %v3043_v46  ;;  %v2477_v46 = vld [vmem:[%s3127_s12] ss:$0 sm:$0xff]  ;;  %s2749_s12 = smov [#allocation17]  }
 0x344   :  { %v1285_v63 = vadd.f32 %v1281_v58, %v3049_v52  ;;  %s1779_s13 = sshll.u32 %s2749_s12, 4  ;;  %s1780_s13 = int_to_ptr.vmem [resolvable:$true] %s1779_s13 }
 0x345   :  { %v1406_v0 = vpack.c.bf16 %v1170_v31, %v1169_v59 }
 0x346   :  { %v1407_v1 = vpack.c.bf16 %v1285_v63, %v1284_v34 }
 0x347   :  { %1701 = vmatmul.bf16.gmra.mxu2 %v1406_v0 }
 0x348   :  { %1720 = vmatmul.bf16.gmra.mxu3 %v1407_v1 }
 0x3a8   :  { %v1678_v18 = vpop.f32.mrf.mxu1 }
 0x3a9   :  { %v1735_v47 = vpop.f32.mrf.mxu0  ;;  %v1679_v52 = vadd.f32 %v2477_v46, %v1678_v18 }
 0x3b0   :  { %v1680_v38 = vpop.f32.mrf.mxu1 }
 0x3b1   :  { %v1681_v4 = vadd.f32 %v2477_v46, %v1680_v38  ;;  %v1737_v48 = vpop.f32.mrf.mxu0 }
 0x3b8   :  { %v1683_v9 = vpop.f32.mrf.mxu1 }
 0x3b9   :  { %v1684_v14 = vadd.f32 %v2477_v46, %v1683_v9  ;;  %v1740_v29 = vpop.f32.mrf.mxu0 }
 0x3ba   :  { %v1697_v41 = vpop.f32.mrf.mxu2 }
 0x3bb   :  { %v1698_v2 = vadd.f32 %v1697_v41, %v1679_v52  ;;  %v1716_v3 = vpop.f32.mrf.mxu3 }
 0x3bd   :  { %v1717_v44 = vadd.f32 %v1716_v3, %v1698_v2 }
 0x3bf   :  { %v1736_v45 = vadd.f32 %v1735_v47, %v1717_v44 }
 0x3c0   :  { %v1685_v21 = vpop.f32.mrf.mxu1 }
 0x3c1   :  { %1745 = vst [vmem:[#allocation17] sm:$0xff] %v1736_v45  ;;  %v1686_v24 = vadd.f32 %v2477_v46, %v1685_v21  ;;  %v1742_v35 = vpop.f32.mrf.mxu0 }
 0x3c2   :  { %v1699_v50 = vpop.f32.mrf.mxu2 }
 0x3c3   :  { %v1700_v51 = vadd.f32 %v1699_v50, %v1681_v4  ;;  %v1718_v8 = vpop.f32.mrf.mxu3 }
 0x3c5   :  { %v1719_v11 = vadd.f32 %v1718_v8, %v1700_v51 }
 0x3c7   :  { %v1738_v13 = vadd.f32 %v1737_v48, %v1719_v11 }
 0x3c9   :  { %1746 = vst [vmem:[#allocation17 + $0x8] sm:$0xff] %v1738_v13 }
 0x3ca   :  { %v1702_v15 = vpop.f32.mrf.mxu2 }
 0x3cb   :  { %v1703_v17 = vadd.f32 %v1702_v15, %v1684_v14  ;;  %v1721_v19 = vpop.f32.mrf.mxu3 }
 0x3cd   :  { %v1722_v32 = vadd.f32 %v1721_v19, %v1703_v17 }
 0x3cf   :  { %v1741_v23 = vadd.f32 %v1740_v29, %v1722_v32 }
 0x3d1   :  { %1747 = vst [vmem:[#allocation17 + $0x10] sm:$0xff] %v1741_v23 }
 0x3d2   :  { %v1704_v25 = vpop.f32.mrf.mxu2 }
 0x3d3   :  { %v1705_v26 = vadd.f32 %v1704_v25, %v1686_v24  ;;  %v1723_v27 = vpop.f32.mrf.mxu3 }
 0x3d5   :  { %v1724_v28 = vadd.f32 %v1723_v27, %v1705_v26 }
 0x3d7   :  { %v1743_v36 = vadd.f32 %v1742_v35, %v1724_v28 }
 0x3d9   :  { %1748 = vst [vmem:[#allocation17 + $0x18] sm:$0xff] %v1743_v36 }
 0x3da   :  { %1787 = dma.vmem_to_hbm [thread:$0]  %s1780_s13, 512, %s1782_s19, [#allocation16], %s2747_s30, %s2747_s30, %s2748_s1  }
 0x3db   :  { %2728 = dma.done.wait [#allocation4], 512  }
 0x3dc   :  { %2729 = vsyncadd [#allocation4], 4294966784 }
 0x3dd   :  { %2730 = dma.done.wait [#allocation16], 544  }
 0x3de   :  { %2731 = vsyncadd [#allocation16], 4294966752 }
 0x3df   :  { %1800 = vsyncpa [#allocation3], 1 }
 0x3e0   :  { %1801 = vsyncpa [#allocation6], 1 }
 0x3e1   :  { %1802 = vsyncpa [#allocation9], 1 }
 0x3e2   :  { %1803 = vsyncpa [#allocation12], 1 }
 0x3e3   :  { %1804 = vsyncpa [#allocation4], 1 }
 0x3e4   :  { %1805 = vsyncpa [#allocation16], 1 }

</bundles_post_ra>
